<compile_context>
chip_gen: v7x
topology: tpu7x:2x2x1
jax: 0.10.0
libtpu: 0.0.40
codegen_flags: <defaults>
</compile_context>

<pallas_src>
import functools

import jax
import jax.numpy as jnp
import numpy as np
from jax import lax
from jax.experimental import pallas as pl
from jax.experimental.pallas import tpu as pltpu

EPS = 1e-5
_LANE = 128
_SUBLANE_BF16 = 16
_VMEM_BUDGET = 32 * 1024 * 1024   # conservative: leaves headroom on v7x (64 MiB phys)


# ----------------------------- small helpers --------------------------------

def _round_up(x, m):
    return (x + m - 1) // m * m


def _activate(z, activation):
    if activation == "leaky_relu":
        return jnp.where(z > 0, z, 0.2 * z)
    return jnp.maximum(z, 0.0)   # "relu" and fallback, matching the PyTorch module


def _sublane_partials(y):
    """(tm, C) f32 -> ((8, C) partial sum, (8, C) partial sum-of-squares).

    Only aligned (8-row) static slices + VPU adds; the cross-sublane reduce is
    deferred to the finalize step.
    """
    acc_s = y[0:8, :]
    acc_q = acc_s * acc_s
    for blk_i in range(1, y.shape[0] // 8):
        blk = y[8 * blk_i:8 * (blk_i + 1), :]
        acc_s = acc_s + blk
        acc_q = acc_q + blk * blk
    return acc_s, acc_q


# ----------------------------- Pallas kernels --------------------------------

def _conv_bn_act_fused_kernel(p_ref, w_ref, gamma_ref, beta_ref, o_ref,
                              sum_ref, sq_ref, scale_ref, shift_ref, *,
                              count, activation):
    """Single-call fused path (used when K_p <= 2*C_p).

    grid = (2, n_row_tiles):
      phase 0: conv matmul + per-channel partial sum / sumsq in VMEM scratch;
               on the last row tile fold BN into per-channel scale/shift.
      phase 1: recompute the matmul, apply scale/shift + activation, store bf16.
    """
    phase = pl.program_id(0)
    i = pl.program_id(1)
    n_row_tiles = pl.num_programs(1)

    # Conv as a lane-dense MXU matmul: bf16 operands, f32 accumulation.
    y = jnp.dot(p_ref[...], w_ref[...], preferred_element_type=jnp.float32)

    @pl.when(phase == 0)
    def _stats_phase():
        @pl.when(i == 0)
        def _init():
            sum_ref[...] = jnp.zeros_like(sum_ref)
            sq_ref[...] = jnp.zeros_like(sq_ref)

        acc_s, acc_q = _sublane_partials(y)
        sum_ref[...] += acc_s
        sq_ref[...] += acc_q

        @pl.when(i == n_row_tiles - 1)
        def _finalize():
            mean = jnp.sum(sum_ref[...], axis=0, keepdims=True) / count
            ex2 = jnp.sum(sq_ref[...], axis=0, keepdims=True) / count
            var = ex2 - mean * mean          # biased var (torch BN train-mode)
            inv = lax.rsqrt(var + EPS)
            scale = gamma_ref[...] * inv
            scale_ref[...] = scale
            shift_ref[...] = beta_ref[...] - mean * scale

    @pl.when(phase == 1)
    def _normalize_phase():
        z = y * scale_ref[...] + shift_ref[...]
        o_ref[...] = _activate(z, activation).astype(o_ref.dtype)


def _conv_stats_kernel(p_ref, w_ref, y_ref, sum_ref, sq_ref):
    """Two-pass path, pass 1: conv matmul, cache y in bf16, partial channel stats."""
    i = pl.program_id(0)

    @pl.when(i == 0)
    def _init():
        sum_ref[...] = jnp.zeros_like(sum_ref)
        sq_ref[...] = jnp.zeros_like(sq_ref)

    y = jnp.dot(p_ref[...], w_ref[...], preferred_element_type=jnp.float32)
    y_ref[...] = y.astype(y_ref.dtype)
    acc_s, acc_q = _sublane_partials(y)
    sum_ref[...] += acc_s
    sq_ref[...] += acc_q


def _bn_act_kernel(y_ref, scale_ref, shift_ref, o_ref, *, activation):
    """Two-pass path, pass 2: normalize + activation on the cached bf16 y."""
    z = y_ref[...].astype(jnp.float32) * scale_ref[...] + shift_ref[...]
    o_ref[...] = _activate(z, activation).astype(o_ref.dtype)


# ------------------------------- pallas_call glue -----------------------------

def _fused_call(patches_p, w2d, gamma2d, beta2d, P, tm, K_p, C_p,
                activation, vmem_limit):
    P_p = patches_p.shape[0]
    grid = (2, P_p // tm)   # (phase, row-tile)
    return pl.pallas_call(
        functools.partial(_conv_bn_act_fused_kernel, count=float(P),
                          activation=activation),
        out_shape=jax.ShapeDtypeStruct((P_p, C_p), jnp.bfloat16),
        grid=grid,
        in_specs=[
            pl.BlockSpec((tm, K_p), lambda p, i: (i, 0)),      # patch row tile
            pl.BlockSpec((K_p, C_p), lambda p, i: (0, 0)),     # resident weights
            pl.BlockSpec((1, C_p), lambda p, i: (0, 0)),       # gamma
            pl.BlockSpec((1, C_p), lambda p, i: (0, 0)),       # beta
        ],
        # Phase 0 (p=0): output block index pinned at 0 -> resident, never flushed
        # (phase 1, i=0 rewrites it before any index change). Phase 1 writes each
        # row tile exactly once.
        out_specs=pl.BlockSpec((tm, C_p), lambda p, i: (i * p, 0)),
        scratch_shapes=[
            pltpu.VMEM((8, C_p), jnp.float32),   # per-sublane partial sums
            pltpu.VMEM((8, C_p), jnp.float32),   # per-sublane partial sum-of-squares
            pltpu.VMEM((1, C_p), jnp.float32),   # folded BN scale
            pltpu.VMEM((1, C_p), jnp.float32),   # folded BN shift
        ],
        compiler_params=pltpu.CompilerParams(
            dimension_semantics=("arbitrary", "arbitrary"),
            vmem_limit_bytes=vmem_limit),
    )(patches_p, w2d, gamma2d, beta2d)


def _two_pass_call(patches_p, w2d, gamma2d, beta2d, P, tm, K_p, C_p,
                   activation, vmem_limit):
    P_p = patches_p.shape[0]
    grid = (P_p // tm,)

    # Pass 1: conv matmul, cache y in bf16, per-channel partial sum / sumsq.
    y_bf16, s_part, q_part = pl.pallas_call(
        _conv_stats_kernel,
        out_shape=(jax.ShapeDtypeStruct((P_p, C_p), jnp.bfloat16),
                   jax.ShapeDtypeStruct((8, C_p), jnp.float32),
                   jax.ShapeDtypeStruct((8, C_p), jnp.float32)),
        grid=grid,
        in_specs=[
            pl.BlockSpec((tm, K_p), lambda i: (i, 0)),
            pl.BlockSpec((K_p, C_p), lambda i: (0, 0)),
        ],
        out_specs=(
            pl.BlockSpec((tm, C_p), lambda i: (i, 0)),
            pl.BlockSpec((8, C_p), lambda i: (0, 0)),   # resident accumulators
            pl.BlockSpec((8, C_p), lambda i: (0, 0)),
        ),
        compiler_params=pltpu.CompilerParams(
            dimension_semantics=("arbitrary",),
            vmem_limit_bytes=vmem_limit),
    )(patches_p, w2d)

    # Fold BN into per-channel scale/shift in plain JAX (a few C_p-sized vectors).
    mean = jnp.sum(s_part, axis=0, keepdims=True) / float(P)
    ex2 = jnp.sum(q_part, axis=0, keepdims=True) / float(P)
    var = ex2 - mean * mean                       # biased var (torch BN train-mode)
    scale = gamma2d * lax.rsqrt(var + EPS)
    shift = beta2d - mean * scale

    # Pass 2: normalize + activation on the cached bf16 y.  Row axis is "parallel"
    # so v7x can shard it across both TensorCores (separate HBM streams).
    return pl.pallas_call(
        functools.partial(_bn_act_kernel, activation=activation),
        out_shape=jax.ShapeDtypeStruct((P_p, C_p), jnp.bfloat16),
        grid=grid,
        in_specs=[
            pl.BlockSpec((tm, C_p), lambda i: (i, 0)),
            pl.BlockSpec((1, C_p), lambda i: (0, 0)),
            pl.BlockSpec((1, C_p), lambda i: (0, 0)),
        ],
        out_specs=pl.BlockSpec((tm, C_p), lambda i: (i, 0)),
        compiler_params=pltpu.CompilerParams(
            dimension_semantics=("parallel",),
            vmem_limit_bytes=vmem_limit),
    )(y_bf16, scale, shift)


# ------------------------------- JAX wrapper -----------------------------------

def _im2col_bf16(x, kh, kw, stride, padding, P_p, K_p):
    """x: (N, C, H, W) -> zero-padded bf16 patch matrix (P_p, K_p)."""
    x = x.astype(jnp.bfloat16)
    x = jnp.pad(x, ((0, 0), (0, 0), (padding, padding), (padding, padding)))
    N, C, Hp, Wp = x.shape
    OH = (Hp - kh) // stride + 1
    OW = (Wp - kw) // stride + 1
    cols = []
    for i in range(kh):
        for j in range(kw):
            cols.append(x[:, :, i:i + stride * OH:stride, j:j + stride * OW:stride])
    p = jnp.stack(cols, axis=2)                       # (N, C, kh*kw, OH, OW)
    p = p.transpose(0, 3, 4, 1, 2)                    # (N, OH, OW, C, kh*kw)
    p = p.reshape(N * OH * OW, C * kh * kw)           # (P, K)  matches w.reshape(Cout,K)
    P, K = p.shape
    return jnp.pad(p, ((0, P_p - P), (0, K_p - K)))


def conv_block_forward(x, w, b, gamma, beta, *, stride, padding,
                       activation="relu", tile_m=512):
    """ConvBlock forward. x: (N, Cin, H, W) f32, w: (Cout, Cin, kh, kw) f32 ->
    (N, Cout, OH, OW) f32."""
    N, Cin, H, W = x.shape
    Cout, _, kh, kw = w.shape
    del b  # conv bias is exactly cancelled by the BN mean subtraction.

    OH = (H + 2 * padding - kh) // stride + 1
    OW = (W + 2 * padding - kw) // stride + 1
    P = N * OH * OW
    K = Cin * kh * kw

    # Lane-dense padding of the contraction and output-channel dims.
    K_p = _round_up(K, _LANE)
    C_p = _round_up(Cout, _LANE)

    # Row tile: multiple of 16 (bf16 sublane tile), budgeted against VMEM.
    tm = _round_up(min(tile_m, _round_up(P, _SUBLANE_BF16)), _SUBLANE_BF16)
    out_bytes = 2  # bf16 activations

    def _live_bytes(t):
        # double-buffered patch tile + output tile, weights (x2 buffers), small stats.
        return 2 * t * (2 * K_p + out_bytes * C_p) + 2 * 2 * K_p * C_p + 64 * C_p * 4

    while tm > _SUBLANE_BF16 and _live_bytes(tm) > _VMEM_BUDGET:
        tm = _round_up(max(tm // 2, _SUBLANE_BF16), _SUBLANE_BF16)
    P_p = _round_up(P, tm)

    vmem_limit = None
    live = _live_bytes(tm)
    if live > 12 * 1024 * 1024:   # exceeds the smallest default scoped VMEM (v5e)
        vmem_limit = int(min(_round_up(2 * live, 1 << 20), 48 * 1024 * 1024))

    # TODO(synk): replace host-side im2col with in-kernel tap decomposition.
    patches_p = _im2col_bf16(x, kh, kw, stride, padding, P_p, K_p)
    w2d = jnp.pad(w.reshape(Cout, K).T.astype(jnp.bfloat16),
                  ((0, K_p - K), (0, C_p - Cout)))
    gamma2d = jnp.pad(gamma.astype(jnp.float32).reshape(1, Cout),
                      ((0, 0), (0, C_p - Cout)))
    beta2d = jnp.pad(beta.astype(jnp.float32).reshape(1, Cout),
                     ((0, 0), (0, C_p - Cout)))

    if K_p <= 2 * C_p:
        out = _fused_call(patches_p, w2d, gamma2d, beta2d, P, tm, K_p, C_p,
                          activation, vmem_limit)
    else:
        out = _two_pass_call(patches_p, w2d, gamma2d, beta2d, P, tm, K_p, C_p,
                             activation, vmem_limit)

    # TODO(synk): keep bf16 NHWC downstream to skip this layout-fix pass.
    out = out[:P, :Cout].astype(jnp.float32)
    return out.reshape(N, OH, OW, Cout).transpose(0, 3, 1, 2)


# ------------------------------ reference -----------------------------------

def _reference(x, w, b, gamma, beta, *, stride, padding, activation):
    y = lax.conv_general_dilated(
        x, w, (stride, stride), [(padding, padding)] * 2,
        dimension_numbers=("NCHW", "OIHW", "NCHW"))
    y = y + b[None, :, None, None]
    mean = y.mean(axis=(0, 2, 3), keepdims=True)
    var = y.var(axis=(0, 2, 3), keepdims=True)   # biased, like torch BN train-mode
    z = (y - mean) / jnp.sqrt(var + EPS)
    z = z * gamma[None, :, None, None] + beta[None, :, None, None]
    if activation == "leaky_relu":
        return jnp.where(z > 0, z, 0.2 * z)
    return jnp.maximum(z, 0.0)


# --------------------------------- main --------------------------------------

if __name__ == "__main__":
    key = jax.random.PRNGKey(0)

    def _make_params(k, Cin, Cout, kh, kw):
        kx, kw_, kb, kg, kbeta = jax.random.split(k, 5)
        fan_in = Cin * kh * kw
        w = jax.random.uniform(kw_, (Cout, Cin, kh, kw), jnp.float32,
                               minval=-1.0, maxval=1.0) / np.sqrt(fan_in)
        b = jax.random.uniform(kb, (Cout,), jnp.float32, minval=-0.1, maxval=0.1)
        gamma = 1.0 + 0.1 * jax.random.normal(kg, (Cout,), jnp.float32)
        beta = 0.1 * jax.random.normal(kbeta, (Cout,), jnp.float32)
        return kx, w, b, gamma, beta

    k1, k2 = jax.random.split(key)

    # Case 1: ConvBlock(4, 8, 3, stride=1, padding=1, "relu").
    # K_p <= 2*C_p -> single fused pallas_call (recompute) path.
    kx, w, b, gamma, beta = _make_params(k1, 4, 8, 3, 3)
    x = jax.random.normal(kx, (2, 4, 16, 16), jnp.float32)
    out = jax.block_until_ready(conv_block_forward(
        x, w, b, gamma, beta, stride=1, padding=1, activation="relu"))
    ref = _reference(x, w, b, gamma, beta, stride=1, padding=1, activation="relu")
    # Tolerance accounts for bf16 matmul operands and bf16 activation storage.
    np.testing.assert_allclose(np.asarray(out), np.asarray(ref), rtol=2e-2, atol=2e-2)

    # Case 2: ConvBlock(32, 16, 3, 1, 1, "leaky_relu").
    # K_p > 2*C_p -> two-pass path (cache y in bf16, "parallel" normalize pass).
    kx, w, b, gamma, beta = _make_params(k2, 32, 16, 3, 3)
    x = jax.random.normal(kx, (2, 32, 8, 8), jnp.float32)
    out = jax.block_until_ready(conv_block_forward(
        x, w, b, gamma, beta, stride=1, padding=1, activation="leaky_relu"))
    ref = _reference(x, w, b, gamma, beta, stride=1, padding=1,
                     activation="leaky_relu")
    np.testing.assert_allclose(np.asarray(out), np.asarray(ref), rtol=2e-2, atol=2e-2)

    print("KERNEL_OK")
</pallas_src>

<mosaic_0001>
module attributes {stable_mosaic.version = 11 : i64} {
  func.func @_conv_bn_act_fused_kernel(%arg0: i32, %arg1: i32, %arg2: memref<512x128xbf16, #tpu.memory_space<vmem>>, %arg3: memref<128x128xbf16, #tpu.memory_space<vmem>>, %arg4: memref<1x128xf32, #tpu.memory_space<vmem>>, %arg5: memref<1x128xf32, #tpu.memory_space<vmem>>, %arg6: memref<512x128xbf16, #tpu.memory_space<vmem>>, %arg7: memref<8x128xf32, #tpu.memory_space<vmem>>, %arg8: memref<8x128xf32, #tpu.memory_space<vmem>>, %arg9: memref<1x128xf32, #tpu.memory_space<vmem>>, %arg10: memref<1x128xf32, #tpu.memory_space<vmem>>) attributes {dimension_semantics = [#tpu.dimension_semantics<arbitrary>, #tpu.dimension_semantics<arbitrary>], iteration_bounds = array<i64: 2, 1>, scalar_prefetch = 0 : i64, scratch_operands = 4 : i64, tpu.core_type = #tpu.core_type<tc>, window_params = [{transform_indices = @transform_0, window_bounds = array<i64: 512, 128>}, {pipeline_mode = #tpu.pipeline_mode<synchronous>, transform_indices = @transform_1, window_bounds = array<i64: 128, 128>}, {pipeline_mode = #tpu.pipeline_mode<synchronous>, transform_indices = @transform_2, window_bounds = array<i64: 1, 128>}, {pipeline_mode = #tpu.pipeline_mode<synchronous>, transform_indices = @transform_3, window_bounds = array<i64: 1, 128>}, {transform_indices = @transform_4, window_bounds = array<i64: 512, 128>}]} {
    %c0 = arith.constant 0 : index
    %c0_0 = arith.constant 0 : index
    %0 = vector.load %arg2[%c0, %c0_0] : memref<512x128xbf16, #tpu.memory_space<vmem>>, vector<512x128xbf16>
    %c0_1 = arith.constant 0 : index
    %c0_2 = arith.constant 0 : index
    %1 = vector.load %arg3[%c0_1, %c0_2] : memref<128x128xbf16, #tpu.memory_space<vmem>>, vector<128x128xbf16>
    %cst = arith.constant dense<0.000000e+00> : vector<512x128xf32>
    %2 = tpu.matmul %0, %1, %cst {dimension_numbers = #tpu.dot_dimension_numbers<[1], [0], [0], [1], [0, 0, 1, 1], [], []>} : vector<512x128xbf16>, vector<128x128xbf16>, vector<512x128xf32> -> vector<512x128xf32>
    %c0_i32 = arith.constant 0 : i32
    %3 = arith.cmpi eq, %arg0, %c0_i32 : i32
    %4 = arith.extui %3 : i1 to i32
    %c0_i32_3 = arith.constant 0 : i32
    %5 = arith.cmpi ne, %4, %c0_i32_3 : i32
    scf.if %5 {
      %c0_i32_5 = arith.constant 0 : i32
      %9 = arith.cmpi eq, %arg1, %c0_i32_5 : i32
      %10 = arith.extui %9 : i1 to i32
      %c0_i32_6 = arith.constant 0 : i32
      %11 = arith.cmpi ne, %10, %c0_i32_6 : i32
      scf.if %11 {
        %cst_17 = arith.constant 0.000000e+00 : f32
        %275 = vector.broadcast %cst_17 : f32 to vector<8x128xf32>
        %c0_18 = arith.constant 0 : index
        %c0_19 = arith.constant 0 : index
        %276 = vector.load %arg7[%c0_18, %c0_19] : memref<8x128xf32, #tpu.memory_space<vmem>>, vector<8x128xf32>
        tpu.vector_store %arg7[%c0_18, %c0_19], %275 {strides = array<i32>} : memref<8x128xf32, #tpu.memory_space<vmem>>, vector<8x128xf32>,
        %cst_20 = arith.constant 0.000000e+00 : f32
        %277 = vector.broadcast %cst_20 : f32 to vector<8x128xf32>
        %c0_21 = arith.constant 0 : index
        %c0_22 = arith.constant 0 : index
        %278 = vector.load %arg8[%c0_21, %c0_22] : memref<8x128xf32, #tpu.memory_space<vmem>>, vector<8x128xf32>
        tpu.vector_store %arg8[%c0_21, %c0_22], %277 {strides = array<i32>} : memref<8x128xf32, #tpu.memory_space<vmem>>, vector<8x128xf32>,
      } else {
      }
      %12 = vector.extract_strided_slice %2 {offsets = [0, 0], sizes = [8, 128], strides = [1, 1]} : vector<512x128xf32> to vector<8x128xf32>
      %13 = arith.mulf %12, %12 : vector<8x128xf32>
      %14 = vector.extract_strided_slice %2 {offsets = [8, 0], sizes = [8, 128], strides = [1, 1]} : vector<512x128xf32> to vector<8x128xf32>
      %15 = arith.addf %12, %14 : vector<8x128xf32>
      %16 = arith.mulf %14, %14 : vector<8x128xf32>
      %17 = arith.addf %13, %16 : vector<8x128xf32>
      %18 = vector.extract_strided_slice %2 {offsets = [16, 0], sizes = [8, 128], strides = [1, 1]} : vector<512x128xf32> to vector<8x128xf32>
      %19 = arith.addf %15, %18 : vector<8x128xf32>
      %20 = arith.mulf %18, %18 : vector<8x128xf32>
      %21 = arith.addf %17, %20 : vector<8x128xf32>
      %22 = vector.extract_strided_slice %2 {offsets = [24, 0], sizes = [8, 128], strides = [1, 1]} : vector<512x128xf32> to vector<8x128xf32>
      %23 = arith.addf %19, %22 : vector<8x128xf32>
      %24 = arith.mulf %22, %22 : vector<8x128xf32>
      %25 = arith.addf %21, %24 : vector<8x128xf32>
      %26 = vector.extract_strided_slice %2 {offsets = [32, 0], sizes = [8, 128], strides = [1, 1]} : vector<512x128xf32> to vector<8x128xf32>
      %27 = arith.addf %23, %26 : vector<8x128xf32>
      %28 = arith.mulf %26, %26 : vector<8x128xf32>
      %29 = arith.addf %25, %28 : vector<8x128xf32>
      %30 = vector.extract_strided_slice %2 {offsets = [40, 0], sizes = [8, 128], strides = [1, 1]} : vector<512x128xf32> to vector<8x128xf32>
      %31 = arith.addf %27, %30 : vector<8x128xf32>
      %32 = arith.mulf %30, %30 : vector<8x128xf32>
      %33 = arith.addf %29, %32 : vector<8x128xf32>
      %34 = vector.extract_strided_slice %2 {offsets = [48, 0], sizes = [8, 128], strides = [1, 1]} : vector<512x128xf32> to vector<8x128xf32>
      %35 = arith.addf %31, %34 : vector<8x128xf32>
      %36 = arith.mulf %34, %34 : vector<8x128xf32>
      %37 = arith.addf %33, %36 : vector<8x128xf32>
      %38 = vector.extract_strided_slice %2 {offsets = [56, 0], sizes = [8, 128], strides = [1, 1]} : vector<512x128xf32> to vector<8x128xf32>
      %39 = arith.addf %35, %38 : vector<8x128xf32>
      %40 = arith.mulf %38, %38 : vector<8x128xf32>
      %41 = arith.addf %37, %40 : vector<8x128xf32>
      %42 = vector.extract_strided_slice %2 {offsets = [64, 0], sizes = [8, 128], strides = [1, 1]} : vector<512x128xf32> to vector<8x128xf32>
      %43 = arith.addf %39, %42 : vector<8x128xf32>
      %44 = arith.mulf %42, %42 : vector<8x128xf32>
      %45 = arith.addf %41, %44 : vector<8x128xf32>
      %46 = vector.extract_strided_slice %2 {offsets = [72, 0], sizes = [8, 128], strides = [1, 1]} : vector<512x128xf32> to vector<8x128xf32>
      %47 = arith.addf %43, %46 : vector<8x128xf32>
      %48 = arith.mulf %46, %46 : vector<8x128xf32>
      %49 = arith.addf %45, %48 : vector<8x128xf32>
      %50 = vector.extract_strided_slice %2 {offsets = [80, 0], sizes = [8, 128], strides = [1, 1]} : vector<512x128xf32> to vector<8x128xf32>
      %51 = arith.addf %47, %50 : vector<8x128xf32>
      %52 = arith.mulf %50, %50 : vector<8x128xf32>
      %53 = arith.addf %49, %52 : vector<8x128xf32>
      %54 = vector.extract_strided_slice %2 {offsets = [88, 0], sizes = [8, 128], strides = [1, 1]} : vector<512x128xf32> to vector<8x128xf32>
      %55 = arith.addf %51, %54 : vector<8x128xf32>
      %56 = arith.mulf %54, %54 : vector<8x128xf32>
      %57 = arith.addf %53, %56 : vector<8x128xf32>
      %58 = vector.extract_strided_slice %2 {offsets = [96, 0], sizes = [8, 128], strides = [1, 1]} : vector<512x128xf32> to vector<8x128xf32>
      %59 = arith.addf %55, %58 : vector<8x128xf32>
      %60 = arith.mulf %58, %58 : vector<8x128xf32>
      %61 = arith.addf %57, %60 : vector<8x128xf32>
      %62 = vector.extract_strided_slice %2 {offsets = [104, 0], sizes = [8, 128], strides = [1, 1]} : vector<512x128xf32> to vector<8x128xf32>
      %63 = arith.addf %59, %62 : vector<8x128xf32>
      %64 = arith.mulf %62, %62 : vector<8x128xf32>
      %65 = arith.addf %61, %64 : vector<8x128xf32>
      %66 = vector.extract_strided_slice %2 {offsets = [112, 0], sizes = [8, 128], strides = [1, 1]} : vector<512x128xf32> to vector<8x128xf32>
      %67 = arith.addf %63, %66 : vector<8x128xf32>
      %68 = arith.mulf %66, %66 : vector<8x128xf32>
      %69 = arith.addf %65, %68 : vector<8x128xf32>
      %70 = vector.extract_strided_slice %2 {offsets = [120, 0], sizes = [8, 128], strides = [1, 1]} : vector<512x128xf32> to vector<8x128xf32>
      %71 = arith.addf %67, %70 : vector<8x128xf32>
      %72 = arith.mulf %70, %70 : vector<8x128xf32>
      %73 = arith.addf %69, %72 : vector<8x128xf32>
      %74 = vector.extract_strided_slice %2 {offsets = [128, 0], sizes = [8, 128], strides = [1, 1]} : vector<512x128xf32> to vector<8x128xf32>
      %75 = arith.addf %71, %74 : vector<8x128xf32>
      %76 = arith.mulf %74, %74 : vector<8x128xf32>
      %77 = arith.addf %73, %76 : vector<8x128xf32>
      %78 = vector.extract_strided_slice %2 {offsets = [136, 0], sizes = [8, 128], strides = [1, 1]} : vector<512x128xf32> to vector<8x128xf32>
      %79 = arith.addf %75, %78 : vector<8x128xf32>
      %80 = arith.mulf %78, %78 : vector<8x128xf32>
      %81 = arith.addf %77, %80 : vector<8x128xf32>
      %82 = vector.extract_strided_slice %2 {offsets = [144, 0], sizes = [8, 128], strides = [1, 1]} : vector<512x128xf32> to vector<8x128xf32>
      %83 = arith.addf %79, %82 : vector<8x128xf32>
      %84 = arith.mulf %82, %82 : vector<8x128xf32>
      %85 = arith.addf %81, %84 : vector<8x128xf32>
      %86 = vector.extract_strided_slice %2 {offsets = [152, 0], sizes = [8, 128], strides = [1, 1]} : vector<512x128xf32> to vector<8x128xf32>
      %87 = arith.addf %83, %86 : vector<8x128xf32>
      %88 = arith.mulf %86, %86 : vector<8x128xf32>
      %89 = arith.addf %85, %88 : vector<8x128xf32>
      %90 = vector.extract_strided_slice %2 {offsets = [160, 0], sizes = [8, 128], strides = [1, 1]} : vector<512x128xf32> to vector<8x128xf32>
      %91 = arith.addf %87, %90 : vector<8x128xf32>
      %92 = arith.mulf %90, %90 : vector<8x128xf32>
      %93 = arith.addf %89, %92 : vector<8x128xf32>
      %94 = vector.extract_strided_slice %2 {offsets = [168, 0], sizes = [8, 128], strides = [1, 1]} : vector<512x128xf32> to vector<8x128xf32>
      %95 = arith.addf %91, %94 : vector<8x128xf32>
      %96 = arith.mulf %94, %94 : vector<8x128xf32>
      %97 = arith.addf %93, %96 : vector<8x128xf32>
      %98 = vector.extract_strided_slice %2 {offsets = [176, 0], sizes = [8, 128], strides = [1, 1]} : vector<512x128xf32> to vector<8x128xf32>
      %99 = arith.addf %95, %98 : vector<8x128xf32>
      %100 = arith.mulf %98, %98 : vector<8x128xf32>
      %101 = arith.addf %97, %100 : vector<8x128xf32>
      %102 = vector.extract_strided_slice %2 {offsets = [184, 0], sizes = [8, 128], strides = [1, 1]} : vector<512x128xf32> to vector<8x128xf32>
      %103 = arith.addf %99, %102 : vector<8x128xf32>
      %104 = arith.mulf %102, %102 : vector<8x128xf32>
      %105 = arith.addf %101, %104 : vector<8x128xf32>
      %106 = vector.extract_strided_slice %2 {offsets = [192, 0], sizes = [8, 128], strides = [1, 1]} : vector<512x128xf32> to vector<8x128xf32>
      %107 = arith.addf %103, %106 : vector<8x128xf32>
      %108 = arith.mulf %106, %106 : vector<8x128xf32>
      %109 = arith.addf %105, %108 : vector<8x128xf32>
      %110 = vector.extract_strided_slice %2 {offsets = [200, 0], sizes = [8, 128], strides = [1, 1]} : vector<512x128xf32> to vector<8x128xf32>
      %111 = arith.addf %107, %110 : vector<8x128xf32>
      %112 = arith.mulf %110, %110 : vector<8x128xf32>
      %113 = arith.addf %109, %112 : vector<8x128xf32>
      %114 = vector.extract_strided_slice %2 {offsets = [208, 0], sizes = [8, 128], strides = [1, 1]} : vector<512x128xf32> to vector<8x128xf32>
      %115 = arith.addf %111, %114 : vector<8x128xf32>
      %116 = arith.mulf %114, %114 : vector<8x128xf32>
      %117 = arith.addf %113, %116 : vector<8x128xf32>
      %118 = vector.extract_strided_slice %2 {offsets = [216, 0], sizes = [8, 128], strides = [1, 1]} : vector<512x128xf32> to vector<8x128xf32>
      %119 = arith.addf %115, %118 : vector<8x128xf32>
      %120 = arith.mulf %118, %118 : vector<8x128xf32>
      %121 = arith.addf %117, %120 : vector<8x128xf32>
      %122 = vector.extract_strided_slice %2 {offsets = [224, 0], sizes = [8, 128], strides = [1, 1]} : vector<512x128xf32> to vector<8x128xf32>
      %123 = arith.addf %119, %122 : vector<8x128xf32>
      %124 = arith.mulf %122, %122 : vector<8x128xf32>
      %125 = arith.addf %121, %124 : vector<8x128xf32>
      %126 = vector.extract_strided_slice %2 {offsets = [232, 0], sizes = [8, 128], strides = [1, 1]} : vector<512x128xf32> to vector<8x128xf32>
      %127 = arith.addf %123, %126 : vector<8x128xf32>
      %128 = arith.mulf %126, %126 : vector<8x128xf32>
      %129 = arith.addf %125, %128 : vector<8x128xf32>
      %130 = vector.extract_strided_slice %2 {offsets = [240, 0], sizes = [8, 128], strides = [1, 1]} : vector<512x128xf32> to vector<8x128xf32>
      %131 = arith.addf %127, %130 : vector<8x128xf32>
      %132 = arith.mulf %130, %130 : vector<8x128xf32>
      %133 = arith.addf %129, %132 : vector<8x128xf32>
      %134 = vector.extract_strided_slice %2 {offsets = [248, 0], sizes = [8, 128], strides = [1, 1]} : vector<512x128xf32> to vector<8x128xf32>
      %135 = arith.addf %131, %134 : vector<8x128xf32>
      %136 = arith.mulf %134, %134 : vector<8x128xf32>
      %137 = arith.addf %133, %136 : vector<8x128xf32>
      %138 = vector.extract_strided_slice %2 {offsets = [256, 0], sizes = [8, 128], strides = [1, 1]} : vector<512x128xf32> to vector<8x128xf32>
      %139 = arith.addf %135, %138 : vector<8x128xf32>
      %140 = arith.mulf %138, %138 : vector<8x128xf32>
      %141 = arith.addf %137, %140 : vector<8x128xf32>
      %142 = vector.extract_strided_slice %2 {offsets = [264, 0], sizes = [8, 128], strides = [1, 1]} : vector<512x128xf32> to vector<8x128xf32>
      %143 = arith.addf %139, %142 : vector<8x128xf32>
      %144 = arith.mulf %142, %142 : vector<8x128xf32>
      %145 = arith.addf %141, %144 : vector<8x128xf32>
      %146 = vector.extract_strided_slice %2 {offsets = [272, 0], sizes = [8, 128], strides = [1, 1]} : vector<512x128xf32> to vector<8x128xf32>
      %147 = arith.addf %143, %146 : vector<8x128xf32>
      %148 = arith.mulf %146, %146 : vector<8x128xf32>
      %149 = arith.addf %145, %148 : vector<8x128xf32>
      %150 = vector.extract_strided_slice %2 {offsets = [280, 0], sizes = [8, 128], strides = [1, 1]} : vector<512x128xf32> to vector<8x128xf32>
      %151 = arith.addf %147, %150 : vector<8x128xf32>
      %152 = arith.mulf %150, %150 : vector<8x128xf32>
      %153 = arith.addf %149, %152 : vector<8x128xf32>
      %154 = vector.extract_strided_slice %2 {offsets = [288, 0], sizes = [8, 128], strides = [1, 1]} : vector<512x128xf32> to vector<8x128xf32>
      %155 = arith.addf %151, %154 : vector<8x128xf32>
      %156 = arith.mulf %154, %154 : vector<8x128xf32>
      %157 = arith.addf %153, %156 : vector<8x128xf32>
      %158 = vector.extract_strided_slice %2 {offsets = [296, 0], sizes = [8, 128], strides = [1, 1]} : vector<512x128xf32> to vector<8x128xf32>
      %159 = arith.addf %155, %158 : vector<8x128xf32>
      %160 = arith.mulf %158, %158 : vector<8x128xf32>
      %161 = arith.addf %157, %160 : vector<8x128xf32>
      %162 = vector.extract_strided_slice %2 {offsets = [304, 0], sizes = [8, 128], strides = [1, 1]} : vector<512x128xf32> to vector<8x128xf32>
      %163 = arith.addf %159, %162 : vector<8x128xf32>
      %164 = arith.mulf %162, %162 : vector<8x128xf32>
      %165 = arith.addf %161, %164 : vector<8x128xf32>
      %166 = vector.extract_strided_slice %2 {offsets = [312, 0], sizes = [8, 128], strides = [1, 1]} : vector<512x128xf32> to vector<8x128xf32>
      %167 = arith.addf %163, %166 : vector<8x128xf32>
      %168 = arith.mulf %166, %166 : vector<8x128xf32>
      %169 = arith.addf %165, %168 : vector<8x128xf32>
      %170 = vector.extract_strided_slice %2 {offsets = [320, 0], sizes = [8, 128], strides = [1, 1]} : vector<512x128xf32> to vector<8x128xf32>
      %171 = arith.addf %167, %170 : vector<8x128xf32>
      %172 = arith.mulf %170, %170 : vector<8x128xf32>
      %173 = arith.addf %169, %172 : vector<8x128xf32>
      %174 = vector.extract_strided_slice %2 {offsets = [328, 0], sizes = [8, 128], strides = [1, 1]} : vector<512x128xf32> to vector<8x128xf32>
      %175 = arith.addf %171, %174 : vector<8x128xf32>
      %176 = arith.mulf %174, %174 : vector<8x128xf32>
      %177 = arith.addf %173, %176 : vector<8x128xf32>
      %178 = vector.extract_strided_slice %2 {offsets = [336, 0], sizes = [8, 128], strides = [1, 1]} : vector<512x128xf32> to vector<8x128xf32>
      %179 = arith.addf %175, %178 : vector<8x128xf32>
      %180 = arith.mulf %178, %178 : vector<8x128xf32>
      %181 = arith.addf %177, %180 : vector<8x128xf32>
      %182 = vector.extract_strided_slice %2 {offsets = [344, 0], sizes = [8, 128], strides = [1, 1]} : vector<512x128xf32> to vector<8x128xf32>
      %183 = arith.addf %179, %182 : vector<8x128xf32>
      %184 = arith.mulf %182, %182 : vector<8x128xf32>
      %185 = arith.addf %181, %184 : vector<8x128xf32>
      %186 = vector.extract_strided_slice %2 {offsets = [352, 0], sizes = [8, 128], strides = [1, 1]} : vector<512x128xf32> to vector<8x128xf32>
      %187 = arith.addf %183, %186 : vector<8x128xf32>
      %188 = arith.mulf %186, %186 : vector<8x128xf32>
      %189 = arith.addf %185, %188 : vector<8x128xf32>
      %190 = vector.extract_strided_slice %2 {offsets = [360, 0], sizes = [8, 128], strides = [1, 1]} : vector<512x128xf32> to vector<8x128xf32>
      %191 = arith.addf %187, %190 : vector<8x128xf32>
      %192 = arith.mulf %190, %190 : vector<8x128xf32>
      %193 = arith.addf %189, %192 : vector<8x128xf32>
      %194 = vector.extract_strided_slice %2 {offsets = [368, 0], sizes = [8, 128], strides = [1, 1]} : vector<512x128xf32> to vector<8x128xf32>
      %195 = arith.addf %191, %194 : vector<8x128xf32>
      %196 = arith.mulf %194, %194 : vector<8x128xf32>
      %197 = arith.addf %193, %196 : vector<8x128xf32>
      %198 = vector.extract_strided_slice %2 {offsets = [376, 0], sizes = [8, 128], strides = [1, 1]} : vector<512x128xf32> to vector<8x128xf32>
      %199 = arith.addf %195, %198 : vector<8x128xf32>
      %200 = arith.mulf %198, %198 : vector<8x128xf32>
      %201 = arith.addf %197, %200 : vector<8x128xf32>
      %202 = vector.extract_strided_slice %2 {offsets = [384, 0], sizes = [8, 128], strides = [1, 1]} : vector<512x128xf32> to vector<8x128xf32>
      %203 = arith.addf %199, %202 : vector<8x128xf32>
      %204 = arith.mulf %202, %202 : vector<8x128xf32>
      %205 = arith.addf %201, %204 : vector<8x128xf32>
      %206 = vector.extract_strided_slice %2 {offsets = [392, 0], sizes = [8, 128], strides = [1, 1]} : vector<512x128xf32> to vector<8x128xf32>
      %207 = arith.addf %203, %206 : vector<8x128xf32>
      %208 = arith.mulf %206, %206 : vector<8x128xf32>
      %209 = arith.addf %205, %208 : vector<8x128xf32>
      %210 = vector.extract_strided_slice %2 {offsets = [400, 0], sizes = [8, 128], strides = [1, 1]} : vector<512x128xf32> to vector<8x128xf32>
      %211 = arith.addf %207, %210 : vector<8x128xf32>
      %212 = arith.mulf %210, %210 : vector<8x128xf32>
      %213 = arith.addf %209, %212 : vector<8x128xf32>
      %214 = vector.extract_strided_slice %2 {offsets = [408, 0], sizes = [8, 128], strides = [1, 1]} : vector<512x128xf32> to vector<8x128xf32>
      %215 = arith.addf %211, %214 : vector<8x128xf32>
      %216 = arith.mulf %214, %214 : vector<8x128xf32>
      %217 = arith.addf %213, %216 : vector<8x128xf32>
      %218 = vector.extract_strided_slice %2 {offsets = [416, 0], sizes = [8, 128], strides = [1, 1]} : vector<512x128xf32> to vector<8x128xf32>
      %219 = arith.addf %215, %218 : vector<8x128xf32>
      %220 = arith.mulf %218, %218 : vector<8x128xf32>
      %221 = arith.addf %217, %220 : vector<8x128xf32>
      %222 = vector.extract_strided_slice %2 {offsets = [424, 0], sizes = [8, 128], strides = [1, 1]} : vector<512x128xf32> to vector<8x128xf32>
      %223 = arith.addf %219, %222 : vector<8x128xf32>
      %224 = arith.mulf %222, %222 : vector<8x128xf32>
      %225 = arith.addf %221, %224 : vector<8x128xf32>
      %226 = vector.extract_strided_slice %2 {offsets = [432, 0], sizes = [8, 128], strides = [1, 1]} : vector<512x128xf32> to vector<8x128xf32>
      %227 = arith.addf %223, %226 : vector<8x128xf32>
      %228 = arith.mulf %226, %226 : vector<8x128xf32>
      %229 = arith.addf %225, %228 : vector<8x128xf32>
      %230 = vector.extract_strided_slice %2 {offsets = [440, 0], sizes = [8, 128], strides = [1, 1]} : vector<512x128xf32> to vector<8x128xf32>
      %231 = arith.addf %227, %230 : vector<8x128xf32>
      %232 = arith.mulf %230, %230 : vector<8x128xf32>
      %233 = arith.addf %229, %232 : vector<8x128xf32>
      %234 = vector.extract_strided_slice %2 {offsets = [448, 0], sizes = [8, 128], strides = [1, 1]} : vector<512x128xf32> to vector<8x128xf32>
      %235 = arith.addf %231, %234 : vector<8x128xf32>
      %236 = arith.mulf %234, %234 : vector<8x128xf32>
      %237 = arith.addf %233, %236 : vector<8x128xf32>
      %238 = vector.extract_strided_slice %2 {offsets = [456, 0], sizes = [8, 128], strides = [1, 1]} : vector<512x128xf32> to vector<8x128xf32>
      %239 = arith.addf %235, %238 : vector<8x128xf32>
      %240 = arith.mulf %238, %238 : vector<8x128xf32>
      %241 = arith.addf %237, %240 : vector<8x128xf32>
      %242 = vector.extract_strided_slice %2 {offsets = [464, 0], sizes = [8, 128], strides = [1, 1]} : vector<512x128xf32> to vector<8x128xf32>
      %243 = arith.addf %239, %242 : vector<8x128xf32>
      %244 = arith.mulf %242, %242 : vector<8x128xf32>
      %245 = arith.addf %241, %244 : vector<8x128xf32>
      %246 = vector.extract_strided_slice %2 {offsets = [472, 0], sizes = [8, 128], strides = [1, 1]} : vector<512x128xf32> to vector<8x128xf32>
      %247 = arith.addf %243, %246 : vector<8x128xf32>
      %248 = arith.mulf %246, %246 : vector<8x128xf32>
      %249 = arith.addf %245, %248 : vector<8x128xf32>
      %250 = vector.extract_strided_slice %2 {offsets = [480, 0], sizes = [8, 128], strides = [1, 1]} : vector<512x128xf32> to vector<8x128xf32>
      %251 = arith.addf %247, %250 : vector<8x128xf32>
      %252 = arith.mulf %250, %250 : vector<8x128xf32>
      %253 = arith.addf %249, %252 : vector<8x128xf32>
      %254 = vector.extract_strided_slice %2 {offsets = [488, 0], sizes = [8, 128], strides = [1, 1]} : vector<512x128xf32> to vector<8x128xf32>
      %255 = arith.addf %251, %254 : vector<8x128xf32>
      %256 = arith.mulf %254, %254 : vector<8x128xf32>
      %257 = arith.addf %253, %256 : vector<8x128xf32>
      %258 = vector.extract_strided_slice %2 {offsets = [496, 0], sizes = [8, 128], strides = [1, 1]} : vector<512x128xf32> to vector<8x128xf32>
      %259 = arith.addf %255, %258 : vector<8x128xf32>
      %260 = arith.mulf %258, %258 : vector<8x128xf32>
      %261 = arith.addf %257, %260 : vector<8x128xf32>
      %262 = vector.extract_strided_slice %2 {offsets = [504, 0], sizes = [8, 128], strides = [1, 1]} : vector<512x128xf32> to vector<8x128xf32>
      %263 = arith.addf %259, %262 : vector<8x128xf32>
      %264 = arith.mulf %262, %262 : vector<8x128xf32>
      %265 = arith.addf %261, %264 : vector<8x128xf32>
      %c0_7 = arith.constant 0 : index
      %c0_8 = arith.constant 0 : index
      %266 = vector.load %arg7[%c0_7, %c0_8] : memref<8x128xf32, #tpu.memory_space<vmem>>, vector<8x128xf32>
      %267 = arith.addf %266, %263 : vector<8x128xf32>
      %c0_9 = arith.constant 0 : index
      %c0_10 = arith.constant 0 : index
      %268 = vector.load %arg7[%c0_9, %c0_10] : memref<8x128xf32, #tpu.memory_space<vmem>>, vector<8x128xf32>
      tpu.vector_store %arg7[%c0_9, %c0_10], %267 {strides = array<i32>} : memref<8x128xf32, #tpu.memory_space<vmem>>, vector<8x128xf32>,
      %c0_11 = arith.constant 0 : index
      %c0_12 = arith.constant 0 : index
      %269 = vector.load %arg8[%c0_11, %c0_12] : memref<8x128xf32, #tpu.memory_space<vmem>>, vector<8x128xf32>
      %270 = arith.addf %269, %265 : vector<8x128xf32>
      %c0_13 = arith.constant 0 : index
      %c0_14 = arith.constant 0 : index
      %271 = vector.load %arg8[%c0_13, %c0_14] : memref<8x128xf32, #tpu.memory_space<vmem>>, vector<8x128xf32>
      tpu.vector_store %arg8[%c0_13, %c0_14], %270 {strides = array<i32>} : memref<8x128xf32, #tpu.memory_space<vmem>>, vector<8x128xf32>,
      %c0_i32_15 = arith.constant 0 : i32
      %272 = arith.cmpi eq, %arg1, %c0_i32_15 : i32
      %273 = arith.extui %272 : i1 to i32
      %c0_i32_16 = arith.constant 0 : i32
      %274 = arith.cmpi ne, %273, %c0_i32_16 : i32
      scf.if %274 {
        %c0_17 = arith.constant 0 : index
        %c0_18 = arith.constant 0 : index
        %275 = vector.load %arg7[%c0_17, %c0_18] : memref<8x128xf32, #tpu.memory_space<vmem>>, vector<8x128xf32>
        %cst_19 = arith.constant dense<0.000000e+00> : vector<128xf32>
        %276 = vector.multi_reduction <add>, %275, %cst_19 [0] : vector<8x128xf32> to vector<128xf32>
        %277 = vector.shape_cast %276 : vector<128xf32> to vector<1x128xf32>
        %cst_20 = arith.constant 5.120000e+02 : f32
        %278 = vector.broadcast %cst_20 : f32 to vector<1x128xf32>
        %279 = arith.divf %277, %278 : vector<1x128xf32>
        %c0_21 = arith.constant 0 : index
        %c0_22 = arith.constant 0 : index
        %280 = vector.load %arg8[%c0_21, %c0_22] : memref<8x128xf32, #tpu.memory_space<vmem>>, vector<8x128xf32>
        %cst_23 = arith.constant dense<0.000000e+00> : vector<128xf32>
        %281 = vector.multi_reduction <add>, %280, %cst_23 [0] : vector<8x128xf32> to vector<128xf32>
        %282 = vector.shape_cast %281 : vector<128xf32> to vector<1x128xf32>
        %cst_24 = arith.constant 5.120000e+02 : f32
        %283 = vector.broadcast %cst_24 : f32 to vector<1x128xf32>
        %284 = arith.divf %282, %283 : vector<1x128xf32>
        %285 = arith.mulf %279, %279 : vector<1x128xf32>
        %286 = arith.subf %284, %285 : vector<1x128xf32>
        %cst_25 = arith.constant 9.99999974E-6 : f32
        %287 = vector.broadcast %cst_25 : f32 to vector<1x128xf32>
        %288 = arith.addf %286, %287 : vector<1x128xf32>
        %289 = math.rsqrt %288 : vector<1x128xf32>
        %c0_26 = arith.constant 0 : index
        %c0_27 = arith.constant 0 : index
        %290 = vector.load %arg4[%c0_26, %c0_27] : memref<1x128xf32, #tpu.memory_space<vmem>>, vector<1x128xf32>
        %291 = arith.mulf %290, %289 : vector<1x128xf32>
        %c0_28 = arith.constant 0 : index
        %c0_29 = arith.constant 0 : index
        %292 = vector.load %arg9[%c0_28, %c0_29] : memref<1x128xf32, #tpu.memory_space<vmem>>, vector<1x128xf32>
        tpu.vector_store %arg9[%c0_28, %c0_29], %291 {strides = array<i32>} : memref<1x128xf32, #tpu.memory_space<vmem>>, vector<1x128xf32>,
        %c0_30 = arith.constant 0 : index
        %c0_31 = arith.constant 0 : index
        %293 = vector.load %arg5[%c0_30, %c0_31] : memref<1x128xf32, #tpu.memory_space<vmem>>, vector<1x128xf32>
        %294 = arith.mulf %279, %291 : vector<1x128xf32>
        %295 = arith.subf %293, %294 : vector<1x128xf32>
        %c0_32 = arith.constant 0 : index
        %c0_33 = arith.constant 0 : index
        %296 = vector.load %arg10[%c0_32, %c0_33] : memref<1x128xf32, #tpu.memory_space<vmem>>, vector<1x128xf32>
        tpu.vector_store %arg10[%c0_32, %c0_33], %295 {strides = array<i32>} : memref<1x128xf32, #tpu.memory_space<vmem>>, vector<1x128xf32>,
      } else {
      }
    } else {
    }
    %c1_i32 = arith.constant 1 : i32
    %6 = arith.cmpi eq, %arg0, %c1_i32 : i32
    %7 = arith.extui %6 : i1 to i32
    %c0_i32_4 = arith.constant 0 : i32
    %8 = arith.cmpi ne, %7, %c0_i32_4 : i32
    scf.if %8 {
      %c0_5 = arith.constant 0 : index
      %c0_6 = arith.constant 0 : index
      %9 = vector.load %arg9[%c0_5, %c0_6] : memref<1x128xf32, #tpu.memory_space<vmem>>, vector<1x128xf32>
      %10 = vector.broadcast %9 : vector<1x128xf32> to vector<512x128xf32>
      %11 = arith.mulf %2, %10 : vector<512x128xf32>
      %c0_7 = arith.constant 0 : index
      %c0_8 = arith.constant 0 : index
      %12 = vector.load %arg10[%c0_7, %c0_8] : memref<1x128xf32, #tpu.memory_space<vmem>>, vector<1x128xf32>
      %13 = vector.broadcast %12 : vector<1x128xf32> to vector<512x128xf32>
      %14 = arith.addf %11, %13 : vector<512x128xf32>
      %cst_9 = arith.constant 0.000000e+00 : f32
      %15 = vector.broadcast %cst_9 : f32 to vector<512x128xf32>
      %16 = arith.maximumf %14, %15 : vector<512x128xf32>
      %17 = arith.truncf %16 : vector<512x128xf32> to vector<512x128xbf16>
      %c0_10 = arith.constant 0 : index
      %c0_11 = arith.constant 0 : index
      %18 = vector.load %arg6[%c0_10, %c0_11] : memref<512x128xbf16, #tpu.memory_space<vmem>>, vector<512x128xbf16>
      tpu.vector_store %arg6[%c0_10, %c0_11], %17 {strides = array<i32>} : memref<512x128xbf16, #tpu.memory_space<vmem>>, vector<512x128xbf16>,
    } else {
    }
    return
  }
  func.func @transform_0(%arg0: i32, %arg1: i32) -> (i32, i32) {
    %c0_i32 = arith.constant 0 : i32
    %c0_i32_0 = arith.constant 0 : i32
    return %arg1, %c0_i32 : i32, i32
  }
  func.func @transform_1(%arg0: i32, %arg1: i32) -> (i32, i32) {
    %c0_i32 = arith.constant 0 : i32
    %c0_i32_0 = arith.constant 0 : i32
    %c0_i32_1 = arith.constant 0 : i32
    return %c0_i32, %c0_i32_0 : i32, i32
  }
  func.func @transform_2(%arg0: i32, %arg1: i32) -> (i32, i32) {
    %c0_i32 = arith.constant 0 : i32
    %c0_i32_0 = arith.constant 0 : i32
    %c0_i32_1 = arith.constant 0 : i32
    return %c0_i32, %c0_i32_0 : i32, i32
  }
  func.func @transform_3(%arg0: i32, %arg1: i32) -> (i32, i32) {
    %c0_i32 = arith.constant 0 : i32
    %c0_i32_0 = arith.constant 0 : i32
    %c0_i32_1 = arith.constant 0 : i32
    return %c0_i32, %c0_i32_0 : i32, i32
  }
  func.func @transform_4(%arg0: i32, %arg1: i32) -> (i32, i32) {
    %0 = arith.muli %arg1, %arg0 : i32
    %c0_i32 = arith.constant 0 : i32
    %c0_i32_0 = arith.constant 0 : i32
    return %0, %c0_i32 : i32, i32
  }
}

</mosaic_0001>

<bundles_post_ra>
// kernel: tpu_custom_call.1
= control target key start
LH: loop header
LB: loop body
LE: loop exit
PB: predicated region body
PF: predicated region fallthrough
CT: control target
= control target key end

     0   :  { %9 = vsyncpa [#allocation7], 0  ;;  %s3128_s0 = inlined_call_operand.hbm [shape: bf16[512,128], index: 0, kind: input, shape index: {}]   ;;  %s3129_s1 = inlined_call_operand.hbm [shape: bf16[128,128], index: 1, kind: input, shape index: {}]   ;;  %s3130_s2 = inlined_call_operand.vmem [shape: f32[1,128], index: 2, kind: input, shape index: {}]   ;;  %s3131_s3 = inlined_call_operand.vmem [shape: f32[1,128], index: 3, kind: input, shape index: {}]   ;;  %s3132_s4 = inlined_call_operand.hbm [shape: bf16[512,128], index: 4, kind: output, shape index: {}]  }
   0x1   :  { %10 = vsyncpa [#allocation10], 0 }
   0x2   :  { %11 = vsyncpa [#allocation8], 0 }
   0x3   :  { %13 = vsyncpa [#allocation8 + $0x1], 0  ;;  %s2469_s15 = smov 0   ;;  %s2471_s16 = smov 0  }
   0x4   :  { %s2473_s17 = smov 0  }
   0x5 LB: > { %s1705_s18 = sadd.s32 4294967295, %s2435_s17   ;;  %s1706_s19 = sadd.s32 4294967294, %s2435_s17   ;;  %s2435_s17 = sphi %s2473_s17, %s19_s17   ;;  %s2431_s16 = sphi %s2471_s16, %s3227_s16   ;;  %s2427_s15 = sphi %s2469_s15, %s3226_s15  }
   0x6   : > { %s31_s20 = sadd.s32 1, %s2431_s16  ;;  %p1707_p0 = scmp.ge.s32.totalorder %s2435_s17, 1 }
   0x7   : > { %p33_p1 = scmp.ge.s32.totalorder %s31_s20, 2  ;;  %p153_p2 = scmp.lt.s32.totalorder %s2435_s17, 3 }
   0x8   : > { %p2491_p3 = scmp.eq.s32.totalorder %s1705_s18, 0  ;;  %s2437_s23 = smov [#allocation6]  }
   0x9   : > { %s3229_s20 = smov (%p33_p1, %s31_s20), 0  ;;  %p2497_p4 = pnand %p1707_p0, %p153_p2 }
   0xa   : > { %s3160_s21 = scalar_select %p2491_p3, 1, 0 }
   0xb   : > { %s3161_s22 = scalar_select %p2497_p4, 1, 0 }
   0xc   : > { %s168_s24 = sshll.u32 %s2437_s23, 4  ;;  %p2228_p5 = pneg %p2497_p4  ;;  %s169_s24 = int_to_ptr.vmem [resolvable:$true] %s168_s24 }
   0xd   : > { %s2438_s26 = smov [#allocation9]   ;;  %s2319_s30 = scalar_lea.hbm %s3128_s0, 4096 }
   0xe   : > { %p2505_p6 = pnand %p2491_p3, %p2228_p5  ;;  %s181_s27 = sshll.u32 %s2438_s26, 4  ;;  %s2509_s27 = int_to_ptr.vmem [resolvable:$true] %s181_s27 }
   0xf   : > { %p2320_p7 = scmp.ne.s32.totalorder %s3128_s0, %s2319_s30  ;;  %p2326_p11 = scmp.lt.u32.totalorder %s2319_s30, %s3128_s0 }
  0x10   : > { %p2321_p8 = pneg %p2505_p6 }
  0x12   : > { %p2322_p9 = pnand %p2321_p8, %p2320_p7 }
  0x14   : > { %p2323_p10 = pneg %p2322_p9 }
  0x16   : > { %p2328_p12 = pnand %p2326_p11, %p2323_p10 }
  0x18   : > { %2331 = shalt.err (!%p2328_p12)
}
  0x19   : > { %s2332_s9 = scalar_lea.vmem %s169_s24, 4096  ;;  %p2340_p2 = scmp.lt.s32.totalorder %s169_s24, %s169_s24 }
  0x1a   : > { %p2333_p13 = scmp.ne.s32.totalorder %s169_s24, %s2332_s9  ;;  %p2341_p5 = scmp.lt.s32.totalorder %s2332_s9, %s2332_s9 }
  0x1c   : > { %p2335_p0 = pnand %p2333_p13, %p2321_p8  ;;  %p2342_p3 = por %p2341_p5, %p2340_p2 }
  0x1e   : > { %p2336_p1 = pneg %p2335_p0 }
  0x20   : > { %p2343_p4 = pnand %p2342_p3, %p2336_p1 }
  0x22   : > { %2346 = shalt.err (!%p2343_p4)
}
  0x23   : > { %s2439_s10 = smov 64   ;;  %s2440_s11 = smov 4  }
  0x24   : > { %2231 = dma.hbm_to_vmem [thread:$0]  (!%p2505_p6), %s3128_s0, 4096, %s169_s24, [#allocation7], %s2439_s10, %s2439_s10, %s2440_s11  }
  0x25   : > { %s2347_s26 = scalar_lea.hbm %s3129_s1, 1024 }
  0x26   : > { %p2348_p7 = scmp.ne.s32.totalorder %s3129_s1, %s2347_s26  ;;  %p2354_p9 = scmp.lt.u32.totalorder %s2347_s26, %s3129_s1 }
  0x28   : > { %p2350_p3 = pnand %p2348_p7, %p2321_p8 }
  0x2a   : > { %p2351_p4 = pneg %p2350_p3 }
  0x2c   : > { %p2356_p10 = pnand %p2354_p9, %p2351_p4 }
  0x2e   : > { %2359 = shalt.err (!%p2356_p10)
}
  0x2f   : > { %s2360_s24 = scalar_lea.vmem %s2509_s27, 1024  ;;  %p2368_p0 = scmp.lt.s32.totalorder %s2509_s27, %s2509_s27 }
  0x30   : > { %p2361_p11 = scmp.ne.s32.totalorder %s2509_s27, %s2360_s24  ;;  %p2369_p1 = scmp.lt.s32.totalorder %s2360_s24, %s2360_s24 }
  0x32   : > { %p2363_p12 = pnand %p2361_p11, %p2321_p8  ;;  %p2370_p2 = por %p2369_p1, %p2368_p0 }
  0x34   : > { %p2364_p13 = pneg %p2363_p12 }
  0x36   : > { %p2371_p5 = pnand %p2370_p2, %p2364_p13 }
  0x38   : > { %2374 = shalt.err (!%p2371_p5)
}
  0x39   : > { %2234 = dma.hbm_to_vmem [thread:$0]  (!%p2505_p6), %s3129_s1, 1024, %s2509_s27, [#allocation10], %s2439_s10, %s2439_s10, %s2440_s11  }
  0x3a   : > { %p3163_p7 = scmp.ne.s32.totalorder %s3161_s22, 0 }
  0x3c   : > { %203 = sbr.rel (%p3163_p7) target bundleno = 628 (0x274), region = 36 }
  0x43   : > { %p3164_p3 = scmp.ne.s32.totalorder %s3160_s21, 0 }
  0x45   : > { %2414 = dma.done.wait (%p3164_p3), [#allocation7], 4096  }
  0x46   : > { %2416 = vsyncadd (%p3164_p3), [#allocation7], 4294963200 }
  0x47   : > { %2418 = dma.done.wait (%p3164_p3), [#allocation10], 1024  }
  0x48   : > { %2420 = vsyncadd (%p3164_p3), [#allocation10], 4294966272  ;;  %v2277_v0 = vld [vmem:[#allocation9] sm:$0xff]   ;;  %v2278_v1 = vld [vmem:[#allocation9 + $0x8] sm:$0xff]   ;;  %p1753_p6 = scmp.ne.s32.totalorder %s2427_s15, 0 }
  0x49   : > { %2120 = vmatprep.subr.bf16.mxu0 %v2277_v0  ;;  %2200 = vmatprep.subr.bf16.mxu1 %v2277_v0  ;;  %v2279_v2 = vld [vmem:[#allocation9 + $0x10] sm:$0xff]   ;;  %v2280_v3 = vld [vmem:[#allocation9 + $0x18] sm:$0xff]   ;;  %v2285_v4 = vld [vmem:[#allocation6] sm:$0xff]  }
  0x4a   : > { %2121 = vmatpush3.bf16.msra.mxu0 %v2277_v0  ;;  %2208 = vmatpush3.bf16.msra.mxu1 %v2277_v0  ;;  %v2286_v5 = vld [vmem:[#allocation6 + $0x80] sm:$0xff]   ;;  %v2282_v7 = vld [vmem:[#allocation9 + $0x28] sm:$0xff]   ;;  %v2283_v8 = vld [vmem:[#allocation9 + $0x30] sm:$0xff]  }
  0x4b   : > { %2122 = vmatprep.subr.bf16.mxu0 %v2278_v1  ;;  %2201 = vmatprep.subr.bf16.mxu1 %v2278_v1  ;;  %v2281_v6 = vld [vmem:[#allocation9 + $0x20] sm:$0xff]   ;;  %v2284_v9 = vld [vmem:[#allocation9 + $0x38] sm:$0xff]   ;;  %v2287_v10 = vld [vmem:[#allocation6 + $0x8] sm:$0xff]  }
  0x4c   : > { %2136 = vmatprep.mubr.bf16.mxu0 %v2285_v4  ;;  %2168 = vmatprep.mubr.bf16.mxu1 %v2286_v5  ;;  %v2288_v11 = vld [vmem:[#allocation6 + $0x88] sm:$0xff]   ;;  %v2289_v12 = vld [vmem:[#allocation6 + $0x10] sm:$0xff]   ;;  %v2291_v14 = vld [vmem:[#allocation6 + $0x18] sm:$0xff]  }
  0x4d   : > { %v2290_v13 = vld [vmem:[#allocation6 + $0x90] sm:$0xff]   ;;  %v2292_v15 = vld [vmem:[#allocation6 + $0x98] sm:$0xff]   ;;  %v2293_v16 = vld [vmem:[#allocation6 + $0x20] sm:$0xff]  }
  0x4e   : > { %2123 = vmatpush3.bf16.msra.mxu0 %v2278_v1  ;;  %2209 = vmatpush3.bf16.msra.mxu1 %v2278_v1  ;;  %v2294_v17 = vld [vmem:[#allocation6 + $0xa0] sm:$0xff]   ;;  %v2295_v18 = vld [vmem:[#allocation6 + $0x28] sm:$0xff]   ;;  %v2297_v20 = vld [vmem:[#allocation6 + $0x30] sm:$0xff]  }
  0x4f   : > { %2124 = vmatprep.subr.bf16.mxu0 %v2279_v2  ;;  %2202 = vmatprep.subr.bf16.mxu1 %v2279_v2  ;;  %v2296_v19 = vld [vmem:[#allocation6 + $0xa8] sm:$0xff]   ;;  %v2298_v21 = vld [vmem:[#allocation6 + $0xb0] sm:$0xff]   ;;  %v2299_v22 = vld [vmem:[#allocation6 + $0x38] sm:$0xff]  }
  0x50   : > { %v2300_v23 = vld [vmem:[#allocation6 + $0xb8] sm:$0xff]   ;;  %v2301_v24 = vld [vmem:[#allocation6 + $0x40] sm:$0xff]   ;;  %v2303_v26 = vld [vmem:[#allocation6 + $0x48] sm:$0xff]  }
  0x51   : > { %v2302_v25 = vld [vmem:[#allocation6 + $0xc0] sm:$0xff]   ;;  %v2304_v27 = vld [vmem:[#allocation6 + $0xc8] sm:$0xff]   ;;  %v2305_v28 = vld [vmem:[#allocation6 + $0x50] sm:$0xff]  }
  0x52   : > { %2125 = vmatpush3.bf16.msra.mxu0 %v2279_v2  ;;  %2210 = vmatpush3.bf16.msra.mxu1 %v2279_v2  ;;  %v2306_v29 = vld [vmem:[#allocation6 + $0xd0] sm:$0xff]   ;;  %v2307_v30 = vld [vmem:[#allocation6 + $0x58] sm:$0xff]   ;;  %v2309_v32 = vld [vmem:[#allocation6 + $0x60] sm:$0xff]  }
  0x53   : > { %2126 = vmatprep.subr.bf16.mxu0 %v2280_v3  ;;  %2203 = vmatprep.subr.bf16.mxu1 %v2280_v3  ;;  %v2308_v31 = vld [vmem:[#allocation6 + $0xd8] sm:$0xff]   ;;  %v2310_v33 = vld [vmem:[#allocation6 + $0xe0] sm:$0xff]   ;;  %v2311_v34 = vld [vmem:[#allocation6 + $0x68] sm:$0xff]  }
  0x54   : > { %v2312_v35 = vld [vmem:[#allocation6 + $0xe8] sm:$0xff]   ;;  %v2313_v36 = vld [vmem:[#allocation6 + $0x70] sm:$0xff]   ;;  %v2315_v38 = vld [vmem:[#allocation6 + $0x78] sm:$0xff]  }
  0x55   : > { %v2314_v37 = vld [vmem:[#allocation6 + $0xf0] sm:$0xff]   ;;  %v2316_v39 = vld [vmem:[#allocation6 + $0xf8] sm:$0xff]  }
  0x56   : > { %2127 = vmatpush3.bf16.msra.mxu0 %v2280_v3  ;;  %2211 = vmatpush3.bf16.msra.mxu1 %v2280_v3 }
  0x57   : > { %2128 = vmatprep.subr.bf16.mxu0 %v2281_v6  ;;  %2204 = vmatprep.subr.bf16.mxu1 %v2281_v6 }
  0x5a   : > { %2129 = vmatpush3.bf16.msra.mxu0 %v2281_v6  ;;  %2212 = vmatpush3.bf16.msra.mxu1 %v2281_v6 }
  0x5b   : > { %2130 = vmatprep.subr.bf16.mxu0 %v2282_v7  ;;  %2205 = vmatprep.subr.bf16.mxu1 %v2282_v7 }
  0x5e   : > { %2131 = vmatpush3.bf16.msra.mxu0 %v2282_v7  ;;  %2213 = vmatpush3.bf16.msra.mxu1 %v2282_v7 }
  0x5f   : > { %2132 = vmatprep.subr.bf16.mxu0 %v2283_v8  ;;  %2206 = vmatprep.subr.bf16.mxu1 %v2283_v8 }
  0x62   : > { %2133 = vmatpush3.bf16.msra.mxu0 %v2283_v8  ;;  %2214 = vmatpush3.bf16.msra.mxu1 %v2283_v8 }
  0x63   : > { %2134 = vmatprep.subr.bf16.mxu0 %v2284_v9  ;;  %2207 = vmatprep.subr.bf16.mxu1 %v2284_v9 }
  0x66   : > { %2135 = vmatpush3.bf16.msra.mxu0 %v2284_v9  ;;  %2215 = vmatpush3.bf16.msra.mxu1 %v2284_v9 }
  0x69   : > { %2137 = vmatmul.mubr.bf16.vlgmr.msra.gmra.mrb[0].mxu0 %v2287_v10  ;;  %2169 = vmatmul.mubr.bf16.vlgmr.msra.gmra.mrb[0].mxu1 %v2288_v11 }
  0x6a   : > { %2140 = vmatprep.mubr.bf16.mxu0 %v2289_v12  ;;  %2172 = vmatprep.mubr.bf16.mxu1 %v2290_v13 }
  0x71   : > { %2141 = vmatmul.mubr.bf16.gmra.mrb[4].mxu0 %v2291_v14  ;;  %2173 = vmatmul.mubr.bf16.gmra.mrb[4].mxu1 %v2292_v15 }
  0x72   : > { %2144 = vmatprep.mubr.bf16.mxu0 %v2293_v16  ;;  %2176 = vmatprep.mubr.bf16.mxu1 %v2294_v17 }
  0x79   : > { %2145 = vmatmul.mubr.bf16.gmra.mrb[8].mxu0 %v2295_v18  ;;  %2177 = vmatmul.mubr.bf16.gmra.mrb[8].mxu1 %v2296_v19 }
  0x7a   : > { %2148 = vmatprep.mubr.bf16.mxu0 %v2297_v20  ;;  %2180 = vmatprep.mubr.bf16.mxu1 %v2298_v21 }
  0x81   : > { %2149 = vmatmul.mubr.bf16.gmra.mrb[12].mxu0 %v2299_v22  ;;  %2181 = vmatmul.mubr.bf16.gmra.mrb[12].mxu1 %v2300_v23 }
  0x82   : > { %2152 = vmatprep.mubr.bf16.mxu0 %v2301_v24  ;;  %2184 = vmatprep.mubr.bf16.mxu1 %v2302_v25 }
  0x89   : > { %2153 = vmatmul.mubr.bf16.gmra.mrb[16].mxu0 %v2303_v26  ;;  %2185 = vmatmul.mubr.bf16.gmra.mrb[16].mxu1 %v2304_v27 }
  0x8a   : > { %2156 = vmatprep.mubr.bf16.mxu0 %v2305_v28  ;;  %2188 = vmatprep.mubr.bf16.mxu1 %v2306_v29 }
  0x91   : > { %2157 = vmatmul.mubr.bf16.gmra.mrb[20].mxu0 %v2307_v30  ;;  %2189 = vmatmul.mubr.bf16.gmra.mrb[20].mxu1 %v2308_v31 }
  0x92   : > { %2160 = vmatprep.mubr.bf16.mxu0 %v2309_v32  ;;  %2192 = vmatprep.mubr.bf16.mxu1 %v2310_v33 }
  0x99   : > { %2161 = vmatmul.mubr.bf16.gmra.mrb[24].mxu0 %v2311_v34  ;;  %2193 = vmatmul.mubr.bf16.gmra.mrb[24].mxu1 %v2312_v35 }
  0x9a   : > { %2164 = vmatprep.mubr.bf16.mxu0 %v2313_v36  ;;  %2196 = vmatprep.mubr.bf16.mxu1 %v2314_v37 }
  0xa1   : > { %2165 = vmatmul.mubr.bf16.gmra.mrb[28].mxu0 %v2315_v38  ;;  %2197 = vmatmul.mubr.bf16.gmra.mrb[28].mxu1 %v2316_v39 }
 0x13c   : > { %v2568_v40 = vpop.f32.mrb[0].mxu0  ;;  %v2570_v41 = vpop.f32.mrb[0].mxu1 }
 0x13d   : > { %v2572_v42 = vpop.f32.mrb[1].mxu0  ;;  %v2574_v43 = vpop.f32.mrb[1].mxu1 }
 0x13e   : > { %3165 = vst [vmem:[#allocation15_spill] sm:$0xff] %v2572_v42  ;;  %v2576_v44 = vpop.f32.mrb[2].mxu0  ;;  %v2578_v45 = vpop.f32.mrb[2].mxu1 }
 0x13f   : > { %v2580_v46 = vpop.f32.mrb[3].mxu0  ;;  %v2582_v47 = vpop.f32.mrb[3].mxu1 }
 0x140   : > { %3166 = vst [vmem:[#allocation16_spill] sm:$0xff] %v2580_v46 }
 0x144   : > { %v2584_v48 = vpop.f32.mrb[4].mxu0  ;;  %v2586_v49 = vpop.f32.mrb[4].mxu1 }
 0x145   : > { %v2588_v50 = vpop.f32.mrb[5].mxu0  ;;  %v2590_v51 = vpop.f32.mrb[5].mxu1 }
 0x146   : > { %v2592_v52 = vpop.f32.mrb[6].mxu0  ;;  %v2594_v53 = vpop.f32.mrb[6].mxu1 }
 0x147   : > { %v2596_v54 = vpop.f32.mrb[7].mxu0  ;;  %v2598_v55 = vpop.f32.mrb[7].mxu1 }
 0x14c   : > { %v2600_v56 = vpop.f32.mrb[8].mxu0  ;;  %v2602_v57 = vpop.f32.mrb[8].mxu1 }
 0x14d   : > { %3167 = vst [vmem:[#allocation17_spill] sm:$0xff] %v2602_v57  ;;  %v2604_v58 = vpop.f32.mrb[9].mxu0  ;;  %v2606_v59 = vpop.f32.mrb[9].mxu1 }
 0x14e   : > { %v2608_v60 = vpop.f32.mrb[10].mxu0  ;;  %v2610_v61 = vpop.f32.mrb[10].mxu1 }
 0x14f   : > { %3168 = vst [vmem:[#allocation18_spill] sm:$0xff] %v2610_v61  ;;  %v2612_v62 = vpop.f32.mrb[11].mxu0  ;;  %v2614_v63 = vpop.f32.mrb[11].mxu1 }
 0x154   : > { %v2616_v0 = vpop.f32.mrb[12].mxu0  ;;  %v2618_v1 = vpop.f32.mrb[12].mxu1 }
 0x155   : > { %3169 = vst [vmem:[#allocation19_spill] sm:$0xff] %v2618_v1  ;;  %v2620_v2 = vpop.f32.mrb[13].mxu0  ;;  %v2622_v3 = vpop.f32.mrb[13].mxu1 }
 0x156   : > { %3170 = vst [vmem:[#allocation20_spill] sm:$0xff] %v2622_v3  ;;  %v2624_v4 = vpop.f32.mrb[14].mxu0  ;;  %v2626_v5 = vpop.f32.mrb[14].mxu1 }
 0x157   : > { %3171 = vst [vmem:[#allocation21_spill] sm:$0xff] %v2626_v5  ;;  %v2628_v6 = vpop.f32.mrb[15].mxu0  ;;  %v2630_v7 = vpop.f32.mrb[15].mxu1 }
 0x158   : > { %3172 = vst [vmem:[#allocation22_spill] sm:$0xff] %v2630_v7 }
 0x15c   : > { %v2632_v8 = vpop.f32.mrb[16].mxu0  ;;  %v2634_v9 = vpop.f32.mrb[16].mxu1 }
 0x15d   : > { %3173 = vst [vmem:[#allocation23_spill] sm:$0xff] %v2634_v9  ;;  %v2636_v10 = vpop.f32.mrb[17].mxu0  ;;  %v2638_v11 = vpop.f32.mrb[17].mxu1 }
 0x15e   : > { %3174 = vst [vmem:[#allocation24_spill] sm:$0xff] %v2638_v11  ;;  %v2640_v12 = vpop.f32.mrb[18].mxu0  ;;  %v2642_v13 = vpop.f32.mrb[18].mxu1 }
 0x15f   : > { %3175 = vst [vmem:[#allocation25_spill] sm:$0xff] %v2642_v13  ;;  %v2644_v14 = vpop.f32.mrb[19].mxu0  ;;  %v2646_v15 = vpop.f32.mrb[19].mxu1 }
 0x160   : > { %3176 = vst [vmem:[#allocation26_spill] sm:$0xff] %v2646_v15 }
 0x164   : > { %v2648_v16 = vpop.f32.mrb[20].mxu0  ;;  %v2650_v17 = vpop.f32.mrb[20].mxu1 }
 0x165   : > { %3177 = vst [vmem:[#allocation27_spill] sm:$0xff] %v2650_v17  ;;  %v2652_v18 = vpop.f32.mrb[21].mxu0  ;;  %v2654_v19 = vpop.f32.mrb[21].mxu1  ;;  %v862_v17 = vmul.f32 (!%p1753_p6), %v2588_v50, %v2588_v50 }
 0x166   : > { %3178 = vst [vmem:[#allocation28_spill] sm:$0xff] %v2654_v19  ;;  %v2656_v20 = vpop.f32.mrb[22].mxu0  ;;  %v2658_v21 = vpop.f32.mrb[22].mxu1 }
 0x167   : > { %3179 = vst [vmem:[#allocation29_spill] sm:$0xff] %v2658_v21  ;;  %v2660_v22 = vpop.f32.mrb[23].mxu0  ;;  %v2662_v23 = vpop.f32.mrb[23].mxu1 }
 0x168   : > { %3180 = vst [vmem:[#allocation30_spill] sm:$0xff] %v2662_v23 }
 0x16c   : > { %v2664_v24 = vpop.f32.mrb[24].mxu0  ;;  %v2666_v25 = vpop.f32.mrb[24].mxu1 }
 0x16d   : > { %3181 = vst [vmem:[#allocation31_spill] sm:$0xff] %v2666_v25  ;;  %v2668_v26 = vpop.f32.mrb[25].mxu0  ;;  %v2670_v27 = vpop.f32.mrb[25].mxu1  ;;  %v856_v25 = vmul.f32 (!%p1753_p6), %v2568_v40, %v2568_v40 }
 0x16e   : > { %3182 = vst [vmem:[#allocation32_spill] sm:$0xff] %v2670_v27  ;;  %v2672_v28 = vpop.f32.mrb[26].mxu0  ;;  %v2674_v29 = vpop.f32.mrb[26].mxu1 }
 0x16f   : > { %3183 = vst [vmem:[#allocation33_spill] sm:$0xff] %v2674_v29  ;;  %v2676_v30 = vpop.f32.mrb[27].mxu0  ;;  %v2678_v31 = vpop.f32.mrb[27].mxu1  ;;  %v851_v29 = vmul.f32 (!%p1753_p6), %v2572_v42, %v2572_v42 }
 0x170   : > { %3184 = vst [vmem:[#allocation34_spill] sm:$0xff] %v2678_v31 }
 0x172   : > { %844 = sbr.rel (%p1753_p6) target bundleno = 538 (0x21a), region = 48 }
 0x174   : > { %v2680_v32 = vpop.f32.mrb[28].mxu0  ;;  %v2682_v33 = vpop.f32.mrb[28].mxu1 }
 0x175   : > { %3185 = vst [vmem:[#allocation35_spill] sm:$0xff] %v2682_v33  ;;  %v2684_v34 = vpop.f32.mrb[29].mxu0  ;;  %v2686_v35 = vpop.f32.mrb[29].mxu1  ;;  %v852_v33 = vadd.f32 (!%p1753_p6), %v2580_v46, %v2572_v42 }
 0x176   : > { %3186 = vst [vmem:[#allocation36_spill] sm:$0xff] %v2686_v35  ;;  %v2688_v36 = vpop.f32.mrb[30].mxu0  ;;  %v2690_v37 = vpop.f32.mrb[30].mxu1  ;;  %v853_v35 = vmul.f32 (!%p1753_p6), %v2580_v46, %v2580_v46  ;;  %v865_v46 = vmul.f32 (!%p1753_p6), %v2596_v54, %v2596_v54 }
 0x177   : > { %3187 = vst [vmem:[#allocation37_spill] sm:$0xff] %v2690_v37  ;;  %v2692_v38 = vpop.f32.mrb[31].mxu0  ;;  %v2694_v39 = vpop.f32.mrb[31].mxu1  ;;  %v855_v31 = vadd.f32 (!%p1753_p6), %v2568_v40, %v852_v33  ;;  %v868_v33 = vmul.f32 (!%p1753_p6), %v2584_v48, %v2584_v48 }
 0x178   : > { %3188 = vst [vmem:[#allocation38_spill] sm:$0xff] %v2694_v39  ;;  %v854_v37 = vadd.f32 (!%p1753_p6), %v853_v35, %v851_v29  ;;  %v859_v39 = vmul.f32 (!%p1753_p6), %v2576_v44, %v2576_v44 }
 0x179   : > { %v858_v21 = vadd.f32 %v2576_v44, %v855_v31  ;;  %v871_v31 = vmul.f32 %v2592_v52, %v2592_v52 }
 0x17a   : > { %v857_v27 = vadd.f32 %v856_v25, %v854_v37 }
 0x17b   : > { %v861_v42 = vadd.f32 %v858_v21, %v2588_v50  ;;  %v874_v21 = vmul.f32 %v2604_v58, %v2604_v58 }
 0x17c   : > { %v860_v23 = vadd.f32 %v859_v39, %v857_v27 }
 0x17d   : > { %v864_v29 = vadd.f32 %v861_v42, %v2596_v54  ;;  %v877_v42 = vmul.f32 %v2612_v62, %v2612_v62 }
 0x17e   : > { %v863_v19 = vadd.f32 %v862_v17, %v860_v23 }
 0x17f   : > { %v867_v25 = vadd.f32 %v2584_v48, %v864_v29 }
 0x180   : > { %v866_v35 = vadd.f32 %v865_v46, %v863_v19  ;;  %v880_v19 = vmul.f32 %v2600_v56, %v2600_v56 }
 0x181   : > { %v870_v27 = vadd.f32 %v2592_v52, %v867_v25 }
 0x182   : > { %v869_v37 = vadd.f32 %v868_v33, %v866_v35  ;;  %v883_v35 = vmul.f32 %v2608_v60, %v2608_v60 }
 0x183   : > { %v873_v17 = vadd.f32 %v870_v27, %v2604_v58 }
 0x184   : > { %v872_v39 = vadd.f32 %v871_v31, %v869_v37  ;;  %v886_v37 = vmul.f32 %v2620_v2, %v2620_v2 }
 0x185   : > { %v876_v46 = vadd.f32 %v873_v17, %v2612_v62 }
 0x186   : > { %v875_v23 = vadd.f32 %v874_v21, %v872_v39  ;;  %v889_v39 = vmul.f32 %v2628_v6, %v2628_v6 }
 0x187   : > { %v879_v33 = vadd.f32 %v2600_v56, %v876_v46 }
 0x188   : > { %v878_v29 = vadd.f32 %v877_v42, %v875_v23  ;;  %v892_v23 = vmul.f32 %v2616_v0, %v2616_v0 }
 0x189   : > { %v882_v31 = vadd.f32 %v2608_v60, %v879_v33 }
 0x18a   : > { %v881_v25 = vadd.f32 %v880_v19, %v878_v29  ;;  %v895_v29 = vmul.f32 %v2624_v4, %v2624_v4 }
 0x18b   : > { %v885_v21 = vadd.f32 %v882_v31, %v2620_v2 }
 0x18c   : > { %v884_v27 = vadd.f32 %v883_v35, %v881_v25  ;;  %v898_v25 = vmul.f32 %v2636_v10, %v2636_v10 }
 0x18d   : > { %v888_v42 = vadd.f32 %v885_v21, %v2628_v6 }
 0x18e   : > { %v887_v17 = vadd.f32 %v886_v37, %v884_v27  ;;  %v901_v27 = vmul.f32 %v2644_v14, %v2644_v14 }
 0x18f   : > { %v891_v19 = vadd.f32 %v2616_v0, %v888_v42 }
 0x190   : > { %v890_v46 = vadd.f32 %v889_v39, %v887_v17  ;;  %v904_v17 = vmul.f32 %v2632_v8, %v2632_v8 }
 0x191   : > { %v894_v35 = vadd.f32 %v2624_v4, %v891_v19 }
 0x192   : > { %v893_v33 = vadd.f32 %v892_v23, %v890_v46  ;;  %v907_v46 = vmul.f32 %v2640_v12, %v2640_v12 }
 0x193   : > { %v897_v37 = vadd.f32 %v894_v35, %v2636_v10 }
 0x194   : > { %v896_v31 = vadd.f32 %v895_v29, %v893_v33  ;;  %v910_v33 = vmul.f32 %v2652_v18, %v2652_v18 }
 0x195   : > { %v900_v39 = vadd.f32 %v897_v37, %v2644_v14 }
 0x196   : > { %v899_v21 = vadd.f32 %v898_v25, %v896_v31  ;;  %v913_v31 = vmul.f32 %v2660_v22, %v2660_v22 }
 0x197   : > { %v903_v23 = vadd.f32 %v2632_v8, %v900_v39 }
 0x198   : > { %v902_v42 = vadd.f32 %v901_v27, %v899_v21  ;;  %v916_v21 = vmul.f32 %v2648_v16, %v2648_v16 }
 0x199   : > { %v906_v29 = vadd.f32 %v2640_v12, %v903_v23 }
 0x19a   : > { %v905_v19 = vadd.f32 %v904_v17, %v902_v42  ;;  %v919_v42 = vmul.f32 %v2656_v20, %v2656_v20 }
 0x19b   : > { %v909_v25 = vadd.f32 %v906_v29, %v2652_v18 }
 0x19c   : > { %v908_v35 = vadd.f32 %v907_v46, %v905_v19  ;;  %v922_v19 = vmul.f32 %v2668_v26, %v2668_v26 }
 0x19d   : > { %v912_v27 = vadd.f32 %v909_v25, %v2660_v22 }
 0x19e   : > { %v911_v37 = vadd.f32 %v910_v33, %v908_v35  ;;  %v925_v35 = vmul.f32 %v2676_v30, %v2676_v30 }
 0x19f   : > { %v915_v17 = vadd.f32 %v2648_v16, %v912_v27 }
 0x1a0   : > { %v914_v39 = vadd.f32 %v913_v31, %v911_v37  ;;  %v928_v37 = vmul.f32 %v2664_v24, %v2664_v24 }
 0x1a1   : > { %v918_v46 = vadd.f32 %v2656_v20, %v915_v17 }
 0x1a2   : > { %v917_v23 = vadd.f32 %v916_v21, %v914_v39  ;;  %v931_v39 = vmul.f32 %v2672_v28, %v2672_v28 }
 0x1a3   : > { %v921_v33 = vadd.f32 %v918_v46, %v2668_v26 }
 0x1a4   : > { %v920_v29 = vadd.f32 %v919_v42, %v917_v23  ;;  %v934_v23 = vmul.f32 %v2684_v34, %v2684_v34 }
 0x1a5   : > { %v924_v31 = vadd.f32 %v921_v33, %v2676_v30 }
 0x1a6   : > { %v923_v25 = vadd.f32 %v922_v19, %v920_v29  ;;  %v937_v29 = vmul.f32 %v2692_v38, %v2692_v38 }
 0x1a7   : > { %v927_v21 = vadd.f32 %v2664_v24, %v924_v31 }
 0x1a8   : > { %v926_v27 = vadd.f32 %v925_v35, %v923_v25  ;;  %v940_v25 = vmul.f32 %v2680_v32, %v2680_v32 }
 0x1a9   : > { %v930_v42 = vadd.f32 %v2672_v28, %v927_v21 }
 0x1aa   : > { %v929_v17 = vadd.f32 %v928_v37, %v926_v27  ;;  %v943_v27 = vmul.f32 %v2688_v36, %v2688_v36 }
 0x1ab   : > { %v933_v19 = vadd.f32 %v930_v42, %v2684_v34 }
 0x1ac   : > { %v932_v46 = vadd.f32 %v931_v39, %v929_v17  ;;  %v946_v17 = vmul.f32 %v2574_v43, %v2574_v43 }
 0x1ad   : > { %v936_v35 = vadd.f32 %v933_v19, %v2692_v38 }
 0x1ae   : > { %v935_v33 = vadd.f32 %v934_v23, %v932_v46  ;;  %v949_v46 = vmul.f32 %v2582_v47, %v2582_v47 }
 0x1af   : > { %v939_v37 = vadd.f32 %v2680_v32, %v936_v35 }
 0x1b0   : > { %v938_v31 = vadd.f32 %v937_v29, %v935_v33  ;;  %v952_v33 = vmul.f32 %v2570_v41, %v2570_v41 }
 0x1b1   : > { %v942_v39 = vadd.f32 %v2688_v36, %v939_v37 }
 0x1b2   : > { %v941_v21 = vadd.f32 %v940_v25, %v938_v31  ;;  %v955_v31 = vmul.f32 %v2578_v45, %v2578_v45 }
 0x1b3   : > { %v945_v23 = vadd.f32 %v942_v39, %v2574_v43 }
 0x1b4   : > { %v944_v42 = vadd.f32 %v943_v27, %v941_v21  ;;  %v958_v21 = vmul.f32 %v2590_v51, %v2590_v51 }
 0x1b5   : > { %v948_v29 = vadd.f32 %v945_v23, %v2582_v47 }
 0x1b6   : > { %v947_v19 = vadd.f32 %v946_v17, %v944_v42  ;;  %v961_v42 = vmul.f32 %v2598_v55, %v2598_v55 }
 0x1b7   : > { %v951_v25 = vadd.f32 %v2570_v41, %v948_v29 }
 0x1b8   : > { %v950_v35 = vadd.f32 %v949_v46, %v947_v19  ;;  %v964_v19 = vmul.f32 %v2586_v49, %v2586_v49 }
 0x1b9   : > { %v954_v27 = vadd.f32 %v2578_v45, %v951_v25 }
 0x1ba   : > { %v953_v37 = vadd.f32 %v952_v33, %v950_v35  ;;  %v967_v35 = vmul.f32 %v2594_v53, %v2594_v53 }
 0x1bb   : > { %v957_v17 = vadd.f32 %v954_v27, %v2590_v51 }
 0x1bc   : > { %v956_v39 = vadd.f32 %v955_v31, %v953_v37  ;;  %v970_v37 = vmul.f32 %v2606_v59, %v2606_v59 }
 0x1bd   : > { %v960_v46 = vadd.f32 %v957_v17, %v2598_v55 }
 0x1be   : > { %v959_v23 = vadd.f32 %v958_v21, %v956_v39  ;;  %v973_v39 = vmul.f32 %v2614_v63, %v2614_v63 }
 0x1bf   : > { %v963_v33 = vadd.f32 %v2586_v49, %v960_v46 }
 0x1c0   : > { %v962_v29 = vadd.f32 %v961_v42, %v959_v23  ;;  %v976_v23 = vmul.f32 %v2602_v57, %v2602_v57 }
 0x1c1   : > { %v966_v31 = vadd.f32 %v2594_v53, %v963_v33 }
 0x1c2   : > { %v965_v25 = vadd.f32 %v964_v19, %v962_v29  ;;  %v979_v29 = vmul.f32 %v2610_v61, %v2610_v61 }
 0x1c3   : > { %v969_v21 = vadd.f32 %v966_v31, %v2606_v59 }
 0x1c4   : > { %v968_v27 = vadd.f32 %v967_v35, %v965_v25  ;;  %v982_v25 = vmul.f32 %v2622_v3, %v2622_v3 }
 0x1c5   : > { %v972_v42 = vadd.f32 %v969_v21, %v2614_v63 }
 0x1c6   : > { %v971_v17 = vadd.f32 %v970_v37, %v968_v27  ;;  %v985_v27 = vmul.f32 %v2630_v7, %v2630_v7 }
 0x1c7   : > { %v975_v19 = vadd.f32 %v2602_v57, %v972_v42 }
 0x1c8   : > { %v974_v46 = vadd.f32 %v973_v39, %v971_v17  ;;  %v988_v17 = vmul.f32 %v2618_v1, %v2618_v1 }
 0x1c9   : > { %v978_v35 = vadd.f32 %v2610_v61, %v975_v19 }
 0x1ca   : > { %v977_v33 = vadd.f32 %v976_v23, %v974_v46  ;;  %v991_v46 = vmul.f32 %v2626_v5, %v2626_v5 }
 0x1cb   : > { %v981_v37 = vadd.f32 %v978_v35, %v2622_v3 }
 0x1cc   : > { %v980_v31 = vadd.f32 %v979_v29, %v977_v33  ;;  %v994_v33 = vmul.f32 %v2638_v11, %v2638_v11 }
 0x1cd   : > { %v984_v39 = vadd.f32 %v981_v37, %v2630_v7 }
 0x1ce   : > { %v983_v21 = vadd.f32 %v982_v25, %v980_v31  ;;  %v997_v31 = vmul.f32 %v2646_v15, %v2646_v15 }
 0x1cf   : > { %v987_v23 = vadd.f32 %v2618_v1, %v984_v39 }
 0x1d0   : > { %v986_v42 = vadd.f32 %v985_v27, %v983_v21  ;;  %v1000_v21 = vmul.f32 %v2634_v9, %v2634_v9 }
 0x1d1   : > { %v990_v29 = vadd.f32 %v2626_v5, %v987_v23 }
 0x1d2   : > { %v989_v19 = vadd.f32 %v988_v17, %v986_v42  ;;  %v1003_v42 = vmul.f32 %v2642_v13, %v2642_v13 }
 0x1d3   : > { %v993_v25 = vadd.f32 %v990_v29, %v2638_v11 }
 0x1d4   : > { %v992_v35 = vadd.f32 %v991_v46, %v989_v19  ;;  %v3189_v19 = vld [vmem:[#allocation28_spill] sm:$0xff] }
 0x1d5   : > { %v996_v27 = vadd.f32 %v993_v25, %v2646_v15  ;;  %v1006_v29 = vmul.f32 %v3189_v19, %v3189_v19 }
 0x1d6   : > { %v995_v37 = vadd.f32 %v994_v33, %v992_v35  ;;  %v3190_v35 = vld [vmem:[#allocation30_spill] sm:$0xff] }
 0x1d7   : > { %v999_v17 = vadd.f32 %v2634_v9, %v996_v27  ;;  %v1009_v25 = vmul.f32 %v3190_v35, %v3190_v35 }
 0x1d8   : > { %v998_v39 = vadd.f32 %v997_v31, %v995_v37  ;;  %v3191_v37 = vld [vmem:[#allocation27_spill] sm:$0xff] }
 0x1d9   : > { %v1002_v46 = vadd.f32 %v2642_v13, %v999_v17  ;;  %v1012_v27 = vmul.f32 %v3191_v37, %v3191_v37 }
 0x1da   : > { %v1001_v23 = vadd.f32 %v1000_v21, %v998_v39  ;;  %v3192_v39 = vld [vmem:[#allocation29_spill] sm:$0xff] }
 0x1db   : > { %v1005_v33 = vadd.f32 %v1002_v46, %v3189_v19  ;;  %v1015_v17 = vmul.f32 %v3192_v39, %v3192_v39 }
 0x1dc   : > { %v1004_v11 = vadd.f32 %v1003_v42, %v1001_v23  ;;  %v3193_v23 = vld [vmem:[#allocation32_spill] sm:$0xff] }
 0x1dd   : > { %v1008_v31 = vadd.f32 %v1005_v33, %v3190_v35  ;;  %v1018_v46 = vmul.f32 %v3193_v23, %v3193_v23 }
 0x1de   : > { %v1007_v15 = vadd.f32 %v1006_v29, %v1004_v11  ;;  %v3194_v29 = vld [vmem:[#allocation34_spill] sm:$0xff] }
 0x1df   : > { %v1011_v21 = vadd.f32 %v3191_v37, %v1008_v31  ;;  %v1021_v33 = vmul.f32 %v3194_v29, %v3194_v29 }
 0x1e0   : > { %v1010_v9 = vadd.f32 %v1009_v25, %v1007_v15  ;;  %v3195_v25 = vld [vmem:[#allocation31_spill] sm:$0xff] }
 0x1e1   : > { %v1014_v42 = vadd.f32 %v3192_v39, %v1011_v21  ;;  %v1024_v31 = vmul.f32 %v3195_v25, %v3195_v25 }
 0x1e2   : > { %v1013_v13 = vadd.f32 %v1012_v27, %v1010_v9  ;;  %v3196_v27 = vld [vmem:[#allocation33_spill] sm:$0xff] }
 0x1e3   : > { %v1017_v11 = vadd.f32 %v1014_v42, %v3193_v23  ;;  %v1027_v21 = vmul.f32 %v3196_v27, %v3196_v27 }
 0x1e4   : > { %v1016_v19 = vadd.f32 %v1015_v17, %v1013_v13  ;;  %v3197_v17 = vld [vmem:[#allocation36_spill] sm:$0xff] }
 0x1e5   : > { %v1020_v15 = vadd.f32 %v1017_v11, %v3194_v29  ;;  %v1030_v42 = vmul.f32 %v3197_v17, %v3197_v17 }
 0x1e6   : > { %v1019_v35 = vadd.f32 %v1018_v46, %v1016_v19  ;;  %v3198_v19 = vld [vmem:[#allocation38_spill] sm:$0xff] }
 0x1e7   : > { %v1023_v9 = vadd.f32 %v3195_v25, %v1020_v15  ;;  %v1033_v11 = vmul.f32 %v3198_v19, %v3198_v19 }
 0x1e8   : > { %v1022_v37 = vadd.f32 %v1021_v33, %v1019_v35  ;;  %v3199_v35 = vld [vmem:[#allocation35_spill] sm:$0xff] }
 0x1e9   : > { %v1026_v13 = vadd.f32 %v3196_v27, %v1023_v9  ;;  %v1036_v15 = vmul.f32 %v3199_v35, %v3199_v35 }
 0x1ea   : > { %v1025_v39 = vadd.f32 %v1024_v31, %v1022_v37  ;;  %v3200_v37 = vld [vmem:[#allocation37_spill] sm:$0xff] }
 0x1eb   : > { %v1029_v46 = vadd.f32 %v1026_v13, %v3197_v17  ;;  %v1039_v9 = vmul.f32 %v3200_v37, %v3200_v37 }
 0x1ec   : > { %v1028_v23 = vadd.f32 %v1027_v21, %v1025_v39 }
 0x1ed   : > { %v1032_v33 = vadd.f32 %v1029_v46, %v3198_v19 }
 0x1ee   : > { %v1031_v29 = vadd.f32 %v1030_v42, %v1028_v23 }
 0x1ef   : > { %v1035_v31 = vadd.f32 %v3199_v35, %v1032_v33 }
 0x1f0   : > { %v1034_v25 = vadd.f32 %v1033_v11, %v1031_v29 }
 0x1f1   : > { %v1038_v21 = vadd.f32 %v3200_v37, %v1035_v31 }
 0x1f2   : > { %v1037_v27 = vadd.f32 %v1036_v15, %v1034_v25  ;;  %v1071_v25 = vld [vmem:[%s3130_s2] sm:$0x1] }
 0x1f3   : > { %v1051_v13 = vrot.slane %v1038_v21, 4 }
 0x1f4   : > { %v1040_v39 = vadd.f32 %v1039_v9, %v1037_v27 }
 0x1f5   : > { %v1052_v17 = vadd.f32 %v1051_v13, %v1038_v21 }
 0x1f6   : > { %v1060_v5 = vrot.slane %v1040_v39, 4 }
 0x1f7   : > { %v1053_v1 = vrot.slane %v1052_v17, 2 }
 0x1f8   : > { %v1061_v42 = vadd.f32 %v1060_v5, %v1040_v39 }
 0x1f9   : > { %v1054_v23 = vadd.f32 %v1053_v1, %v1052_v17  ;;  %v1074_v1 = vld [vmem:[%s3131_s3] sm:$0x1] }
 0x1fa   : > { %v1062_v46 = vrot.slane %v1061_v42, 2 }
 0x1fb   : > { %v1055_v19 = vrot.slane %v1054_v23, 1 }
 0x1fc   : > { %v1063_v7 = vadd.f32 %v1062_v46, %v1061_v42 }
 0x1fd   : > { %v1056_v3 = vadd.f32 %v1055_v19, %v1054_v23 }
 0x1fe   : > { %v1064_v11 = vrot.slane %v1063_v7, 1 }
 0x1ff   : > { %v1058_v29 = vmul.f32 0.001953125, %v1056_v3 }
 0x200   : > { %v1065_v33 = vadd.f32 %v1064_v11, %v1063_v7 }
 0x201   : > { %v1067_v61 = vmul.f32 %v1058_v29, %v1058_v29 }
 0x202   : > { %v1066_v35 = vmul.f32 0.001953125, %v1065_v33 }
 0x204   : > { %v1068_v57 = vsub.f32 %v1066_v35, %v1067_v61 }
 0x206   : > { %v1069_v15 = vadd.f32 1e-05, %v1068_v57 }
 0x208   : > { %2317 = vrsqrt.f32 %v1069_v15 }
 0x212   : > { %v2318_v31 = vpop.eup %2317 }
 0x213   : > { %v1072_v37 = vmul.f32 %v2318_v31, %v1071_v25 }
 0x215   : > { %1073 = vst [vmem:[#allocation4] sm:$0x1] %v1072_v37  ;;  %v1075_v5 = vmul.f32 %v1072_v37, %v1058_v29 }
 0x217   : > { %v1076_v9 = vsub.f32 %v1074_v1, %v1075_v5 }
 0x219   : > { %1077 = vst [vmem:[#allocation5] sm:$0x1] %v1076_v9 }
 0x21a PF: > { %p1754_p8 = scmp.ne.s32.totalorder %s2427_s15, 1 }
 0x21b   : > { %v3201_v3 = vld [vmem:[#allocation15_spill] sm:$0xff] (!%p1754_p8)  ;;  %v3202_v27 = vld [vmem:[#allocation16_spill] sm:$0xff] (!%p1754_p8) }
 0x21c   : > { %1081 = sbr.rel (%p1754_p8) target bundleno = 604 (0x25c), region = 60  ;;  %v2896_v57 = vld [vmem:[#allocation4] ss:$0 sm:$0xff] (!%p1754_p8) }
 0x21d   : > { %v1089_v7 = vmul.f32 (!%p1754_p8), %v2896_v57, %v3201_v3  ;;  %v1090_v21 = vmul.f32 (!%p1754_p8), %v2896_v57, %v3202_v27  ;;  %v1091_v39 = vmul.f32 (!%p1754_p8), %v2568_v40, %v2896_v57  ;;  %v1092_v13 = vmul.f32 (!%p1754_p8), %v2576_v44, %v2896_v57 }
 0x21e   : > { %v1093_v17 = vmul.f32 (!%p1754_p8), %v2896_v57, %v2588_v50  ;;  %v1094_v42 = vmul.f32 (!%p1754_p8), %v2896_v57, %v2596_v54  ;;  %v1095_v23 = vmul.f32 (!%p1754_p8), %v2584_v48, %v2896_v57  ;;  %v1096_v46 = vmul.f32 (!%p1754_p8), %v2592_v52, %v2896_v57 }
 0x21f   : > { %v1097_v3 = vmul.f32 (!%p1754_p8), %v2896_v57, %v2604_v58  ;;  %v1101_v58 = vmul.f32 (!%p1754_p8), %v2896_v57, %v2620_v2 }
 0x220   : > { %v2898_v61 = vld [vmem:[#allocation5] ss:$0 sm:$0xff] (!%p1754_p8) }
 0x221   : > { %v1160_v19 = vadd.f32 (!%p1754_p8), %v2898_v61, %v1089_v7  ;;  %v1161_v11 = vadd.f32 (!%p1754_p8), %v2898_v61, %v1090_v21  ;;  %v1162_v40 = vadd.f32 (!%p1754_p8), %v2898_v61, %v1091_v39  ;;  %v1163_v44 = vadd.f32 (!%p1754_p8), %v2898_v61, %v1092_v13 }
 0x222   : > { %v1164_v29 = vadd.f32 (!%p1754_p8), %v2898_v61, %v1093_v17  ;;  %v1165_v50 = vadd.f32 (!%p1754_p8), %v2898_v61, %v1094_v42  ;;  %v1166_v54 = vadd.f32 (!%p1754_p8), %v2898_v61, %v1095_v23  ;;  %v1167_v33 = vadd.f32 (!%p1754_p8), %v2898_v61, %v1096_v46 }
 0x223   : > { %v1224_v48 = vmax.f32 %v1160_v19, 0.0  ;;  %v1225_v35 = vmax.f32 %v1161_v11, 0.0  ;;  %v1226_v15 = vmax.f32 %v1162_v40, 0.0  ;;  %v1227_v52 = vmax.f32 %v1163_v44, 0.0 }
 0x224   : > { %v1228_v25 = vmax.f32 %v1164_v29, 0.0  ;;  %v1229_v31 = vmax.f32 %v1165_v50, 0.0  ;;  %v1230_v37 = vmax.f32 %v1166_v54, 0.0  ;;  %v1231_v1 = vmax.f32 %v1167_v33, 0.0 }
 0x225   : > { %v1892_v5 = vpack.c.bf16 %v1225_v35, %v1224_v48  ;;  %v1897_v9 = vpack.c.bf16 %v1227_v52, %v1226_v15  ;;  %v1098_v7 = vmul.f32 %v2896_v57, %v2612_v62  ;;  %v1099_v39 = vmul.f32 %v2600_v56, %v2896_v57 }
 0x226   : > { %v1902_v27 = vpack.c.bf16 %v1229_v31, %v1228_v25  ;;  %v1907_v21 = vpack.c.bf16 %v1231_v1, %v1230_v37  ;;  %v1100_v13 = vmul.f32 %v2608_v60, %v2896_v57  ;;  %v1168_v17 = vadd.f32 %v2898_v61, %v1097_v3 }
 0x227   : > { %1893 = vst [vmem:[#allocation11] sm:$0xff] %v1892_v5   ;;  %2049 = vst [vmem:[#allocation11 + $0x8] sm:$0xff] %v1897_v9   ;;  %v1169_v42 = vadd.f32 %v2898_v61, %v1098_v7  ;;  %v1102_v62 = vmul.f32 %v2896_v57, %v2628_v6  ;;  %v1170_v23 = vadd.f32 %v2898_v61, %v1099_v39 }
 0x228   : > { %2050 = vst [vmem:[#allocation11 + $0x10] sm:$0xff] %v1902_v27   ;;  %2051 = vst [vmem:[#allocation11 + $0x18] sm:$0xff] %v1907_v21   ;;  %v1171_v56 = vadd.f32 %v2898_v61, %v1100_v13  ;;  %v1103_v60 = vmul.f32 %v2616_v0, %v2896_v57  ;;  %v1104_v46 = vmul.f32 %v2624_v4, %v2896_v57  ;;  %v1232_v19 = vmax.f32 %v1168_v17, 0.0 }
 0x229   : > { %v1233_v11 = vmax.f32 %v1169_v42, 0.0  ;;  %v1172_v40 = vadd.f32 %v2898_v61, %v1101_v58  ;;  %v1173_v2 = vadd.f32 %v2898_v61, %v1102_v62  ;;  %v1234_v44 = vmax.f32 %v1170_v23, 0.0 }
 0x22a   : > { %v1235_v6 = vmax.f32 %v1171_v56, 0.0  ;;  %v1174_v29 = vadd.f32 %v2898_v61, %v1103_v60  ;;  %v1175_v50 = vadd.f32 %v2898_v61, %v1104_v46  ;;  %v1105_v0 = vmul.f32 %v2896_v57, %v2636_v10 }
 0x22b   : > { %v1912_v54 = vpack.c.bf16 %v1233_v11, %v1232_v19  ;;  %v1236_v33 = vmax.f32 %v1172_v40, 0.0  ;;  %v1237_v48 = vmax.f32 %v1173_v2, 0.0  ;;  %v1106_v52 = vmul.f32 %v2896_v57, %v2644_v14 }
 0x22c   : > { %v1917_v35 = vpack.c.bf16 %v1235_v6, %v1234_v44  ;;  %v1238_v4 = vmax.f32 %v1174_v29, 0.0  ;;  %v1239_v15 = vmax.f32 %v1175_v50, 0.0  ;;  %v1176_v31 = vadd.f32 %v2898_v61, %v1105_v0 }
 0x22d   : > { %2052 = vst [vmem:[#allocation11 + $0x20] sm:$0xff] %v1912_v54   ;;  %v1922_v25 = vpack.c.bf16 %v1237_v48, %v1236_v33  ;;  %v1107_v37 = vmul.f32 %v2632_v8, %v2896_v57  ;;  %v1108_v1 = vmul.f32 %v2640_v12, %v2896_v57  ;;  %v1177_v10 = vadd.f32 %v2898_v61, %v1106_v52 }
 0x22e   : > { %2053 = vst [vmem:[#allocation11 + $0x28] sm:$0xff] %v1917_v35   ;;  %v1927_v5 = vpack.c.bf16 %v1239_v15, %v1238_v4  ;;  %v1109_v9 = vmul.f32 %v2896_v57, %v2652_v18  ;;  %v1110_v14 = vmul.f32 %v2896_v57, %v2660_v22  ;;  %v1240_v3 = vmax.f32 %v1176_v31, 0.0 }
 0x22f   : > { %2054 = vst [vmem:[#allocation11 + $0x30] sm:$0xff] %v1922_v25   ;;  %v1178_v7 = vadd.f32 %v2898_v61, %v1107_v37  ;;  %v1179_v27 = vadd.f32 %v2898_v61, %v1108_v1  ;;  %v1111_v8 = vmul.f32 %v2648_v16, %v2896_v57  ;;  %v1241_v12 = vmax.f32 %v1177_v10, 0.0 }
 0x230   : > { %2055 = vst [vmem:[#allocation11 + $0x38] sm:$0xff] %v1927_v5   ;;  %v1180_v21 = vadd.f32 %v2898_v61, %v1109_v9  ;;  %v1181_v39 = vadd.f32 %v2898_v61, %v1110_v14  ;;  %v1112_v18 = vmul.f32 %v2656_v20, %v2896_v57  ;;  %v1113_v42 = vmul.f32 %v2896_v57, %v2668_v26 }
 0x231   : > { %v1242_v13 = vmax.f32 %v1178_v7, 0.0  ;;  %v1243_v22 = vmax.f32 %v1179_v27, 0.0  ;;  %v1182_v17 = vadd.f32 %v2898_v61, %v1111_v8  ;;  %v1932_v58 = vpack.c.bf16 %v1241_v12, %v1240_v3 }
 0x232   : > { %v1244_v62 = vmax.f32 %v1180_v21, 0.0  ;;  %v1245_v23 = vmax.f32 %v1181_v39, 0.0  ;;  %v1183_v16 = vadd.f32 %v2898_v61, %v1112_v18  ;;  %v1114_v46 = vmul.f32 %v2896_v57, %v2676_v30 }
 0x233   : > { %v1937_v56 = vpack.c.bf16 %v1243_v22, %v1242_v13  ;;  %v1246_v60 = vmax.f32 %v1182_v17, 0.0  ;;  %v1184_v19 = vadd.f32 %v2898_v61, %v1113_v42  ;;  %2056 = vst [vmem:[#allocation11 + $0x40] sm:$0xff] %v1932_v58   ;;  %v1115_v40 = vmul.f32 %v2664_v24, %v2896_v57 }
 0x234   : > { %v1942_v20 = vpack.c.bf16 %v1245_v23, %v1244_v62  ;;  %v1247_v11 = vmax.f32 %v1183_v16, 0.0  ;;  %v1116_v26 = vmul.f32 %v2672_v28, %v2896_v57  ;;  %v1185_v2 = vadd.f32 %v2898_v61, %v1114_v46  ;;  %v3203_v46 = vld [vmem:[#allocation17_spill] sm:$0xff] }
 0x235   : > { %2057 = vst [vmem:[#allocation11 + $0x48] sm:$0xff] %v1937_v56   ;;  %v1248_v44 = vmax.f32 %v1184_v19, 0.0  ;;  %v1117_v6 = vmul.f32 %v2896_v57, %v2684_v34  ;;  %v1118_v30 = vmul.f32 %v2896_v57, %v2692_v38  ;;  %v1186_v50 = vadd.f32 %v2898_v61, %v1115_v40 }
 0x236   : > { %2058 = vst [vmem:[#allocation11 + $0x50] sm:$0xff] %v1942_v20   ;;  %v1947_v29 = vpack.c.bf16 %v1247_v11, %v1246_v60  ;;  %v1187_v54 = vadd.f32 %v2898_v61, %v1116_v26  ;;  %v1119_v24 = vmul.f32 %v2680_v32, %v2896_v57  ;;  %v1249_v28 = vmax.f32 %v1185_v2, 0.0  ;;  %v3205_v26 = vld [vmem:[#allocation20_spill] sm:$0xff] }
 0x237   : > { %v1188_v33 = vadd.f32 %v2898_v61, %v1117_v6  ;;  %v1189_v48 = vadd.f32 %v2898_v61, %v1118_v30  ;;  %v1120_v34 = vmul.f32 %v2688_v36, %v2896_v57  ;;  %v1250_v0 = vmax.f32 %v1186_v50, 0.0  ;;  %v3207_v50 = vld [vmem:[#allocation19_spill] sm:$0xff] }
 0x238   : > { %2059 = vst [vmem:[#allocation11 + $0x58] sm:$0xff] %v1947_v29   ;;  %v1251_v38 = vmax.f32 %v1187_v54, 0.0  ;;  %v1190_v35 = vadd.f32 %v2898_v61, %v1119_v24  ;;  %v1121_v4 = vmul.f32 %v2896_v57, %v2574_v43  ;;  %v1952_v15 = vpack.c.bf16 %v1249_v28, %v1248_v44  ;;  %v3206_v44 = vld [vmem:[#allocation22_spill] sm:$0xff] }
 0x239   : > { %v1252_v52 = vmax.f32 %v1188_v33, 0.0  ;;  %v1253_v25 = vmax.f32 %v1189_v48, 0.0  ;;  %v1191_v32 = vadd.f32 %v2898_v61, %v1120_v34  ;;  %v1122_v1 = vmul.f32 %v2896_v57, %v2582_v47  ;;  %v3208_v48 = vld [vmem:[#allocation21_spill] sm:$0xff] }
 0x23a   : > { %v1957_v31 = vpack.c.bf16 %v1251_v38, %v1250_v0  ;;  %v1254_v37 = vmax.f32 %v1190_v35, 0.0  ;;  %v1192_v36 = vadd.f32 %v2898_v61, %v1121_v4  ;;  %2060 = vst [vmem:[#allocation11 + $0x60] sm:$0xff] %v1952_v15   ;;  %v1123_v9 = vmul.f32 %v2570_v41, %v2896_v57  ;;  %v3209_v4 = vld [vmem:[#allocation24_spill] sm:$0xff] }
 0x23b   : > { %v1962_v5 = vpack.c.bf16 %v1253_v25, %v1252_v52  ;;  %v1255_v10 = vmax.f32 %v1191_v32, 0.0  ;;  %v1124_v43 = vmul.f32 %v2578_v45, %v2896_v57  ;;  %v1193_v14 = vadd.f32 %v2898_v61, %v1122_v1 }
 0x23c   : > { %2061 = vst [vmem:[#allocation11 + $0x68] sm:$0xff] %v1957_v31   ;;  %v1256_v3 = vmax.f32 %v1192_v36, 0.0  ;;  %v1125_v7 = vmul.f32 %v2896_v57, %v2590_v51  ;;  %v1126_v47 = vmul.f32 %v2896_v57, %v2598_v55  ;;  %v1194_v8 = vadd.f32 %v2898_v61, %v1123_v9  ;;  %v3210_v36 = vld [vmem:[#allocation26_spill] sm:$0xff] }
 0x23d   : > { %2062 = vst [vmem:[#allocation11 + $0x70] sm:$0xff] %v1962_v5   ;;  %v1967_v27 = vpack.c.bf16 %v1255_v10, %v1254_v37  ;;  %v1195_v12 = vadd.f32 %v2898_v61, %v1124_v43  ;;  %v1127_v41 = vmul.f32 %v2586_v49, %v2896_v57  ;;  %v1257_v45 = vmax.f32 %v1193_v14, 0.0  ;;  %v3211_v14 = vld [vmem:[#allocation23_spill] sm:$0xff] }
 0x23e   : > { %v1196_v21 = vadd.f32 %v2898_v61, %v1125_v7  ;;  %v1197_v39 = vadd.f32 %v2898_v61, %v1126_v47  ;;  %v1128_v51 = vmul.f32 %v2594_v53, %v2896_v57  ;;  %v1258_v18 = vmax.f32 %v1194_v8, 0.0  ;;  %v3212_v7 = vld [vmem:[#allocation25_spill] sm:$0xff] }
 0x23f   : > { %2063 = vst [vmem:[#allocation11 + $0x78] sm:$0xff] %v1967_v27   ;;  %v1259_v55 = vmax.f32 %v1195_v12, 0.0  ;;  %v1198_v13 = vadd.f32 %v2898_v61, %v1127_v41  ;;  %v1129_v22 = vmul.f32 %v2896_v57, %v2606_v59  ;;  %v1972_v17 = vpack.c.bf16 %v1257_v45, %v1256_v3  ;;  %v3204_v59 = vld [vmem:[#allocation18_spill] sm:$0xff]  ;;  %v3213_v12 = vld [vmem:[#allocation28_spill] sm:$0xff] }
 0x240   : > { %v1260_v42 = vmax.f32 %v1196_v21, 0.0  ;;  %v1261_v58 = vmax.f32 %v1197_v39, 0.0  ;;  %v1199_v49 = vadd.f32 %v2898_v61, %v1128_v51  ;;  %v1130_v16 = vmul.f32 %v2896_v57, %v2614_v63  ;;  %v3214_v45 = vld [vmem:[#allocation30_spill] sm:$0xff] }
 0x241   : > { %v1977_v62 = vpack.c.bf16 %v1259_v55, %v1258_v18  ;;  %v1262_v23 = vmax.f32 %v1198_v13, 0.0  ;;  %v1200_v53 = vadd.f32 %v2898_v61, %v1129_v22  ;;  %2064 = vst [vmem:[#allocation11 + $0x80] sm:$0xff] %v1972_v17   ;;  %v1131_v19 = vmul.f32 %v3203_v46, %v2896_v57  ;;  %v3215_v55 = vld [vmem:[#allocation27_spill] sm:$0xff] }
 0x242   : > { %v1982_v56 = vpack.c.bf16 %v1261_v58, %v1260_v42  ;;  %v1263_v60 = vmax.f32 %v1199_v49, 0.0  ;;  %v1132_v20 = vmul.f32 %v3204_v59, %v2896_v57  ;;  %v1201_v11 = vadd.f32 %v2898_v61, %v1130_v16  ;;  %v3216_v58 = vld [vmem:[#allocation29_spill] sm:$0xff] }
 0x243   : > { %2065 = vst [vmem:[#allocation11 + $0x88] sm:$0xff] %v1977_v62   ;;  %v1264_v40 = vmax.f32 %v1200_v53, 0.0  ;;  %v1133_v2 = vmul.f32 %v2896_v57, %v3205_v26  ;;  %v1134_v63 = vmul.f32 %v2896_v57, %v3206_v44  ;;  %v1202_v30 = vadd.f32 %v2898_v61, %v1131_v19  ;;  %v3217_v53 = vld [vmem:[#allocation32_spill] sm:$0xff] }
 0x244   : > { %2066 = vst [vmem:[#allocation11 + $0x90] sm:$0xff] %v1982_v56   ;;  %v1987_v6 = vpack.c.bf16 %v1263_v60, %v1262_v23  ;;  %v1203_v29 = vadd.f32 %v2898_v61, %v1132_v20  ;;  %v1135_v54 = vmul.f32 %v3207_v50, %v2896_v57  ;;  %v1265_v24 = vmax.f32 %v1201_v11, 0.0 }
 0x245   : > { %v1204_v28 = vadd.f32 %v2898_v61, %v1133_v2  ;;  %v1205_v33 = vadd.f32 %v2898_v61, %v1134_v63  ;;  %v1136_v34 = vmul.f32 %v3208_v48, %v2896_v57  ;;  %v1266_v0 = vmax.f32 %v1202_v30, 0.0  ;;  %v3222_v48 = vld [vmem:[#allocation38_spill] sm:$0xff] }
 0x246   : > { %2067 = vst [vmem:[#allocation11 + $0x98] sm:$0xff] %v1987_v6   ;;  %v1267_v38 = vmax.f32 %v1203_v29, 0.0  ;;  %v1206_v35 = vadd.f32 %v2898_v61, %v1135_v54  ;;  %v1137_v15 = vmul.f32 %v2896_v57, %v3209_v4  ;;  %v1992_v52 = vpack.c.bf16 %v1265_v24, %v1264_v40  ;;  %v3218_v40 = vld [vmem:[#allocation34_spill] sm:$0xff]  ;;  %v3219_v6 = vld [vmem:[#allocation31_spill] sm:$0xff]  ;;  %v3220_v29 = vld [vmem:[#allocation33_spill] sm:$0xff] }
 0x247   : > { %v1268_v25 = vmax.f32 %v1204_v28, 0.0  ;;  %v1269_v32 = vmax.f32 %v1205_v33, 0.0  ;;  %v1207_v31 = vadd.f32 %v2898_v61, %v1136_v34  ;;  %v1138_v5 = vmul.f32 %v2896_v57, %v3210_v36  ;;  %v3221_v28 = vld [vmem:[#allocation36_spill] sm:$0xff]  ;;  %v3223_v4 = vld [vmem:[#allocation35_spill] sm:$0xff] }
 0x248   : > { %v1997_v37 = vpack.c.bf16 %v1267_v38, %v1266_v0  ;;  %v1270_v1 = vmax.f32 %v1206_v35, 0.0  ;;  %v1208_v10 = vadd.f32 %v2898_v61, %v1137_v15  ;;  %2068 = vst [vmem:[#allocation11 + $0xa0] sm:$0xff] %v1992_v52   ;;  %v1139_v3 = vmul.f32 %v3211_v14, %v2896_v57 }
 0x249   : > { %v2002_v9 = vpack.c.bf16 %v1269_v32, %v1268_v25  ;;  %v1271_v43 = vmax.f32 %v1207_v31, 0.0  ;;  %v1140_v47 = vmul.f32 %v3212_v7, %v2896_v57  ;;  %v1209_v27 = vadd.f32 %v2898_v61, %v1138_v5  ;;  %v3224_v31 = vld [vmem:[#allocation37_spill] sm:$0xff] }
 0x24a   : > { %2069 = vst [vmem:[#allocation11 + $0xa8] sm:$0xff] %v1997_v37   ;;  %v1272_v8 = vmax.f32 %v1208_v10, 0.0  ;;  %v1141_v41 = vmul.f32 %v2896_v57, %v3213_v12  ;;  %v1142_v21 = vmul.f32 %v2896_v57, %v3214_v45  ;;  %v1210_v51 = vadd.f32 %v2898_v61, %v1139_v3 }
 0x24b   : > { %2070 = vst [vmem:[#allocation11 + $0xb0] sm:$0xff] %v2002_v9   ;;  %v2007_v39 = vpack.c.bf16 %v1271_v43, %v1270_v1  ;;  %v1211_v18 = vadd.f32 %v2898_v61, %v1140_v47  ;;  %v1143_v13 = vmul.f32 %v3215_v55, %v2896_v57  ;;  %v1273_v22 = vmax.f32 %v1209_v27, 0.0 }
 0x24c   : > { %v1212_v17 = vadd.f32 %v2898_v61, %v1141_v41  ;;  %v1213_v42 = vadd.f32 %v2898_v61, %v1142_v21  ;;  %v1144_v49 = vmul.f32 %v3216_v58, %v2896_v57  ;;  %v1274_v62 = vmax.f32 %v1210_v51, 0.0 }
 0x24d   : > { %2071 = vst [vmem:[#allocation11 + $0xb8] sm:$0xff] %v2007_v39   ;;  %v1275_v23 = vmax.f32 %v1211_v18, 0.0  ;;  %v1214_v16 = vadd.f32 %v2898_v61, %v1143_v13  ;;  %v1145_v56 = vmul.f32 %v2896_v57, %v3217_v53  ;;  %v2012_v60 = vpack.c.bf16 %v1273_v22, %v1272_v8 }
 0x24e   : > { %v1276_v46 = vmax.f32 %v1212_v17, 0.0  ;;  %v1277_v19 = vmax.f32 %v1213_v42, 0.0  ;;  %v1215_v59 = vadd.f32 %v2898_v61, %v1144_v49  ;;  %v1146_v26 = vmul.f32 %v2896_v57, %v3218_v40 }
 0x24f   : > { %v2017_v20 = vpack.c.bf16 %v1275_v23, %v1274_v62  ;;  %v1278_v11 = vmax.f32 %v1214_v16, 0.0  ;;  %v1216_v2 = vadd.f32 %v2898_v61, %v1145_v56  ;;  %2072 = vst [vmem:[#allocation11 + $0xc0] sm:$0xff] %v2012_v60   ;;  %v1147_v30 = vmul.f32 %v3219_v6, %v2896_v57 }
 0x250   : > { %v2022_v44 = vpack.c.bf16 %v1277_v19, %v1276_v46  ;;  %v1279_v63 = vmax.f32 %v1215_v59, 0.0  ;;  %v1148_v50 = vmul.f32 %v3220_v29, %v2896_v57  ;;  %v1217_v54 = vadd.f32 %v2898_v61, %v1146_v26 }
 0x251   : > { %2073 = vst [vmem:[#allocation11 + $0xc8] sm:$0xff] %v2017_v20   ;;  %v1280_v24 = vmax.f32 %v1216_v2, 0.0  ;;  %v1149_v33 = vmul.f32 %v2896_v57, %v3221_v28  ;;  %v1150_v34 = vmul.f32 %v2896_v57, %v3222_v48  ;;  %v1218_v38 = vadd.f32 %v2898_v61, %v1147_v30 }
 0x252   : > { %2074 = vst [vmem:[#allocation11 + $0xd0] sm:$0xff] %v2022_v44   ;;  %v2027_v0 = vpack.c.bf16 %v1279_v63, %v1278_v11  ;;  %v1219_v35 = vadd.f32 %v2898_v61, %v1148_v50  ;;  %v1151_v15 = vmul.f32 %v3223_v4, %v2896_v57  ;;  %v1281_v52 = vmax.f32 %v1217_v54, 0.0 }
 0x253   : > { %v1220_v25 = vadd.f32 %v2898_v61, %v1149_v33  ;;  %v1221_v32 = vadd.f32 %v2898_v61, %v1150_v34  ;;  %v1152_v37 = vmul.f32 %v3224_v31, %v2896_v57  ;;  %v1282_v1 = vmax.f32 %v1218_v38, 0.0 }
 0x254   : > { %2075 = vst [vmem:[#allocation11 + $0xd8] sm:$0xff] %v2027_v0   ;;  %v1283_v36 = vmax.f32 %v1219_v35, 0.0  ;;  %v1222_v5 = vadd.f32 %v2898_v61, %v1151_v15  ;;  %v2032_v10 = vpack.c.bf16 %v1281_v52, %v1280_v24 }
 0x255   : > { %v1284_v9 = vmax.f32 %v1220_v25, 0.0  ;;  %v1285_v43 = vmax.f32 %v1221_v32, 0.0  ;;  %v1223_v14 = vadd.f32 %v2898_v61, %v1152_v37 }
 0x256   : > { %v2037_v3 = vpack.c.bf16 %v1283_v36, %v1282_v1  ;;  %v1286_v7 = vmax.f32 %v1222_v5, 0.0  ;;  %2076 = vst [vmem:[#allocation11 + $0xe0] sm:$0xff] %v2032_v10  }
 0x257   : > { %v2042_v47 = vpack.c.bf16 %v1285_v43, %v1284_v9  ;;  %v1287_v27 = vmax.f32 %v1223_v14, 0.0 }
 0x258   : > { %2077 = vst [vmem:[#allocation11 + $0xe8] sm:$0xff] %v2037_v3  }
 0x259   : > { %2078 = vst [vmem:[#allocation11 + $0xf0] sm:$0xff] %v2042_v47   ;;  %v2047_v8 = vpack.c.bf16 %v1287_v27, %v1286_v7 }
 0x25b   : > { %2079 = vst [vmem:[#allocation11 + $0xf8] sm:$0xff] %v2047_v8  }
 0x25c PF: > { %p3094_p4 = scmp.eq.s32.totalorder %s1705_s18, 1  ;;  %s2441_s8 = smov [#allocation11]  }
 0x25d   : > { %s1623_s9 = sshll.u32 %s2441_s8, 4  ;;  %s1624_s9 = int_to_ptr.vmem [resolvable:$true] %s1623_s9 }
 0x25e   : > { %s2375_s10 = scalar_lea.vmem %s1624_s9, 4096  ;;  %s2381_s11 = scalar_lea.vmem %s1624_s9, 8192 }
 0x25f   : > { %p2376_p9 = scmp.ne.s32.totalorder %s1624_s9, %s2375_s10  ;;  %p2382_p12 = scmp.lt.s32.totalorder %s1624_s9, %s1624_s9 }
 0x260   : > { %p2383_p13 = scmp.lt.s32.totalorder %s2381_s11, %s2375_s10 }
 0x261   : > { %p2377_p10 = pnand %p2376_p9, %p3094_p4 }
 0x262   : > { %p2384_p0 = por %p2383_p13, %p2382_p12 }
 0x263   : > { %p2378_p11 = pneg %p2377_p10 }
 0x265   : > { %p2385_p1 = pnand %p2384_p0, %p2378_p11 }
 0x267   : > { %2388 = shalt.err (!%p2385_p1)
}
 0x268   : > { %s2389_s13 = scalar_lea.hbm %s3132_s4, 4096 }
 0x269   : > { %p2390_p2 = scmp.ne.s32.totalorder %s3132_s4, %s2389_s13  ;;  %p2395_p3 = scmp.lt.u32.totalorder %s2389_s13, %s3132_s4 }
 0x26b   : > { %p2391_p5 = pnand %p2390_p2, %p3094_p4 }
 0x26d   : > { %p2392_p7 = pneg %p2391_p5 }
 0x26f   : > { %p2397_p6 = pnand %p2395_p3, %p2392_p7 }
 0x271   : > { %2400 = shalt.err (!%p2397_p6)
}
 0x272   : > { %s2442_s29 = smov 64   ;;  %s2443_s30 = smov 4  }
 0x273   : > { %2225 = dma.vmem_to_hbm [thread:$0]  (%p3094_p4), %s1624_s9, 4096, %s3132_s4, [#allocation8], %s2442_s29, %s2442_s29, %s2443_s30  }
 0x274 PF: > { %p2244_p8 = scmp.ge.s32.totalorder %s2435_s17, 2  ;;  %p2245_p9 = scmp.eq.s32.totalorder %s1706_s19, 1 }
 0x276   : > { %p2236_p10 = pnand %p2245_p9, %p2244_p8 }
 0x278   : > { %2422 = dma.done.wait (!%p2236_p10), [#allocation8], 4096  }
 0x279   : > { %2424 = vsyncadd (!%p2236_p10), [#allocation8], 4294963200  ;;  %s19_s17 = sadd.s32 1, %s2435_s17   ;;  %s3226_s15 = smov %s2431_s16 }
 0x27a   : > { %p16_p11 = scmp.ge.s32.totalorder %s19_s17, 4   ;;  %s3227_s16 = smov %s3229_s20 }
 0x27c   :  { %18 = sbr.rel (!%p16_p11) target bundleno = 5 (0x5), region = 94 }
 0x283   :  { %1644 = vsyncpa [#allocation7], 1 }
 0x284   :  { %1646 = vsyncpa [#allocation7 + $0x1], 1 }
 0x285   :  { %1647 = vsyncpa [#allocation10], 1 }
 0x286   :  { %1648 = vsyncpa [#allocation8], 1 }
 0x287   :  { %1650 = vsyncpa [#allocation8 + $0x1], 1 }

</bundles_post_ra>
